<compile_context>
chip_gen: v7x
topology: tpu7x:2x2x1
jax: 0.10.0
libtpu: 0.0.40
codegen_flags: <defaults>
</compile_context>

<pallas_src>
import functools

import jax
import jax.numpy as jnp
from jax import lax
from jax.experimental import pallas as pl
from jax.experimental.pallas import tpu as pltpu

EPS = 1e-5
LANE = 128


def _round_up(x, m):
    return (x + m - 1) // m * m


def _layernorm(x, g, b):
    mu = jnp.mean(x, axis=-1, keepdims=True)
    xc = x - mu
    var = jnp.mean(xc * xc, axis=-1, keepdims=True)
    return xc * lax.rsqrt(var + EPS) * g + b


# ------------------------------------------------------------------- kernel --

def _fused_encoder_kernel(patches_ref, pe_w_ref, pe_b_ref, tok_ref, tpe_ref,
                          ln1g_ref, ln1b_ref, wqkv_ref, bqkv_ref,
                          wo_ref, bo_ref, ln2g_ref, ln2b_ref,
                          w1_ref, b1_ref, w2_ref, b2_ref,
                          fng_ref, fnb_ref, outw_ref, outb_ref,
                          o_ref, h_ref, qkv_ref, ocat_ref,
                          *, num_heads, num_layers, num_extra, num_patch,
                          batch_tile):
    S, Np, TB, H = num_extra, num_patch, batch_tile, num_heads
    N = S + Np
    D = h_ref.shape[-1]
    P = patches_ref.shape[-1]
    hd = D // H
    scale = hd ** -0.5
    bf16 = jnp.bfloat16

    # ---- patch embed: one (TB*Np, P) @ (P, D) MXU matmul --------------------
    if TB == 1:
        pflat = patches_ref[0]                                     # (Np, P)
    else:
        pflat = patches_ref[...].reshape(TB * Np, P)               # (TB*Np, P)
    xp = jnp.dot(pflat.astype(bf16), pe_w_ref[...],
                 preferred_element_type=jnp.float32) + pe_b_ref[...]   # f32

    # ---- token_first concat into the persistent f32 activation buffer ------
    tok = tok_ref[...] + tpe_ref[...]                               # (S, D) f32
    for b in range(TB):                                             # static, tiny
        h_ref[b * N:b * N + S, :] = tok
        h_ref[b * N + S:(b + 1) * N, :] = xp[b * Np:(b + 1) * Np, :]

    # ---- transformer layers -------------------------------------------------
    def layer_body(li):
        h = h_ref[...]                                              # (TB*N, D) f32

        # token mixer: h = h + MHA(LN(h)); fused QKV projection.
        xn = _layernorm(h, ln1g_ref[li], ln1b_ref[li])
        qkv = jnp.dot(xn.astype(bf16), wqkv_ref[li],
                      preferred_element_type=jnp.float32) + bqkv_ref[li]
        qkv_ref[...] = qkv.astype(bf16)                             # (TB*N, 3D)

        for hh in range(H):                                         # static unroll
            q = qkv_ref[:, hh * hd:(hh + 1) * hd].reshape(TB, N, hd)
            k = qkv_ref[:, D + hh * hd:D + (hh + 1) * hd].reshape(TB, N, hd)
            v = qkv_ref[:, 2 * D + hh * hd:2 * D + (hh + 1) * hd].reshape(TB, N, hd)
            s = jnp.einsum('bqd,bkd->bqk', q, k,
                           preferred_element_type=jnp.float32) * scale
            s = s - jnp.max(s, axis=-1, keepdims=True)
            p = jnp.exp(s)
            p = p * pl.reciprocal(jnp.sum(p, axis=-1, keepdims=True), approx=True)
            o = jnp.einsum('bqk,bkd->bqd', p.astype(bf16), v,
                           preferred_element_type=jnp.float32)      # (TB, N, hd)
            ocat_ref[:, hh * hd:(hh + 1) * hd] = (
                o.reshape(TB * N, hd).astype(bf16))

        # concat(heads) @ Wo in a single MXU contraction over D.
        h = h + jnp.dot(ocat_ref[...], wo_ref[li],
                        preferred_element_type=jnp.float32) + bo_ref[li]

        # channel mixer: h = h + FFN(LN(h))  (Linear -> SiLU -> Linear)
        xn2 = _layernorm(h, ln2g_ref[li], ln2b_ref[li])
        mid = jnp.dot(xn2.astype(bf16), w1_ref[li],
                      preferred_element_type=jnp.float32) + b1_ref[li]
        mid = mid * jax.nn.sigmoid(mid)                             # SiLU, f32
        h = h + jnp.dot(mid.astype(bf16), w2_ref[li],
                        preferred_element_type=jnp.float32) + b2_ref[li]
        h_ref[...] = h

    if num_layers <= 8:
        for li in range(num_layers):      # short trip count: unroll
            layer_body(li)
    else:
        pl.loop(0, num_layers)(layer_body)  # deep: bounded code size / vregs

    # ---- token_first=True: keep the first S rows of every sample -----------
    if TB == 1:
        hf = h_ref[0:S, :]
    else:
        hf = jnp.concatenate(
            [h_ref[b * N:b * N + S, :] for b in range(TB)], axis=0)  # (TB*S, D)
    y = jnp.dot(_layernorm(hf, fng_ref[...], fnb_ref[...]).astype(bf16),
                outw_ref[...], preferred_element_type=jnp.float32) + outb_ref[...]
    if TB == 1:
        o_ref[0] = y.astype(o_ref.dtype)
    else:
        o_ref[...] = y.reshape(TB, S, o_ref.shape[-1]).astype(o_ref.dtype)


# ------------------------------------------------------------------ wrapper --

_WNAMES = ("pe_w", "pe_b", "extra_token", "token_pe",
           "ln1_g", "ln1_b", "wqkv", "bqkv", "wo", "bo",
           "ln2_g", "ln2_b", "w1", "b1", "w2", "b2",
           "fn_g", "fn_b", "out_w", "out_b")


def _rep_spec(shape):
    zeros = (0,) * len(shape)
    return pl.BlockSpec(shape, lambda i, _z=zeros: _z)


def fused_encoder(patches, params, cfg):
    B, Np, P = patches.shape
    D, S, O = cfg["embed_dim"], cfg["sample_step"], cfg["out_dim"]
    L, H = cfg["num_layers"], cfg["num_heads"]
    N = S + Np

    # Batch tile: aim for ~256 M-rows per step but keep >= 2 grid steps when
    # B >= 2 so both v7x TensorCores stay busy (harmless on v5e/v6e).
    tb = max(1, min(max(1, 256 // N), -(-B // 2)))
    b_pad = _round_up(B, tb)
    n_steps = b_pad // tb

    # Lane-dense output: pad out_proj columns to a multiple of 128.
    O_pad = _round_up(O, LANE)
    out_w, out_b = params["out_w"], params["out_b"]
    if O_pad != O:
        out_w = jnp.pad(out_w, ((0, 0), (0, O_pad - O)))
        out_b = jnp.pad(out_b, ((0, 0), (0, O_pad - O)))

    if b_pad != B:
        patches = jnp.pad(patches, ((0, b_pad - B), (0, 0), (0, 0)))

    weights = [params[n] for n in _WNAMES[:-2]] + [out_w, out_b]

    kernel = functools.partial(
        _fused_encoder_kernel, num_heads=H, num_layers=L,
        num_extra=S, num_patch=Np, batch_tile=tb)

    out = pl.pallas_call(
        kernel,
        out_shape=jax.ShapeDtypeStruct((b_pad, S, O_pad), jnp.float32),
        grid=(n_steps,),
        in_specs=[pl.BlockSpec((tb, Np, P), lambda i: (i, 0, 0))] +
                 [_rep_spec(w.shape) for w in weights],
        out_specs=pl.BlockSpec((tb, S, O_pad), lambda i: (i, 0, 0)),
        scratch_shapes=[
            pltpu.VMEM((tb * N, D), jnp.float32),     # activation h
            pltpu.VMEM((tb * N, 3 * D), jnp.bfloat16),  # fused qkv
            pltpu.VMEM((tb * N, D), jnp.bfloat16),    # concat(heads)
        ],
        compiler_params=pltpu.CompilerParams(
            dimension_semantics=("parallel",),
            vmem_limit_bytes=32 * 1024 * 1024),
    )(patches, *weights)

    return out[:B, :, :O]                      # slice off batch / lane padding


# --------------------------------------------------------------------- glue --

def extract_patches(x, patch_size):
    # x: (B, C, H, W) NCHW  ->  (B, num_patch, C*p*p), matching Conv2d im2col.
    B, C, Himg, Wimg = x.shape
    p = patch_size
    hp, wp = Himg // p, Wimg // p
    x = x.reshape(B, C, hp, p, wp, p)
    x = x.transpose(0, 2, 4, 1, 3, 5)          # (B, hp, wp, C, p, p)
    return x.reshape(B, hp * wp, C * p * p)


def init_params(key, cfg):
    D, mid, O = cfg["embed_dim"], cfg["mid_dim"], cfg["out_dim"]
    C, p = cfg["in_channels"], cfg["patch_size"]
    L, S = cfg["num_layers"], cfg["sample_step"]
    P = C * p * p
    std = cfg["init_std"]
    keys = jax.random.split(key, 8)
    bf16 = jnp.bfloat16

    def nrm(k, shape, s=std, dtype=bf16):
        return (s * jax.random.normal(k, shape)).astype(dtype)

    # Matmul weights stored in bf16 (MXU-native); biases / LN params / tokens
    # stay f32 (VPU-side math, v5e has no bf16 VPU).
    return {
        "pe_w": nrm(keys[0], (P, D)),                 # Conv2d weight, flattened
        "pe_b": jnp.zeros((1, D), jnp.float32),
        "extra_token": nrm(keys[1], (S, D), s=D ** -0.5, dtype=jnp.float32),
        "token_pe": nrm(keys[2], (S, D), dtype=jnp.float32),  # 'learnable' PE
        "ln1_g": jnp.ones((L, 1, D), jnp.float32),
        "ln1_b": jnp.zeros((L, 1, D), jnp.float32),
        # Fused QKV: columns [0:D]=Q, [D:2D]=K, [2D:3D]=V, each head-major
        # blocks of hd — same linear map as Linear(D, 3D) split per head.
        "wqkv": nrm(keys[3], (L, D, 3 * D)),
        "bqkv": jnp.zeros((L, 1, 3 * D), jnp.float32),
        # Output projection of concat(heads): rows head-major (== stacked Wo[h]).
        "wo": nrm(keys[4], (L, D, D)),
        "bo": jnp.zeros((L, 1, D), jnp.float32),
        "ln2_g": jnp.ones((L, 1, D), jnp.float32),
        "ln2_b": jnp.zeros((L, 1, D), jnp.float32),
        "w1": nrm(keys[5], (L, D, mid)),
        "b1": jnp.zeros((L, 1, mid), jnp.float32),
        "w2": nrm(keys[6], (L, mid, D)),
        "b2": jnp.zeros((L, 1, D), jnp.float32),
        "fn_g": jnp.ones((1, D), jnp.float32),
        "fn_b": jnp.zeros((1, D), jnp.float32),
        "out_w": nrm(keys[7], (D, O)),
        "out_b": jnp.zeros((1, O), jnp.float32),
    }


def wmtc_encoder_forward(params, x, cfg):
    # TODO(synk): use_ape=True SinCosPe / 'sincos' / 'concat' token_pe branches
    # and the num_extra_token==0 branch are not exercised by this config and
    # are not implemented.
    patches = extract_patches(x, cfg["patch_size"])   # (B, Np, C*p*p), XLA glue
    # Output is f32 (matches the f32 reference model) regardless of image dtype.
    return fused_encoder(patches, params, cfg)        # (B, sample_step, out_dim)


if __name__ == "__main__":
    cfg = dict(
        image_size=16, patch_size=8, in_channels=4,
        embed_dim=32,           # cfg.hidden_channels
        num_heads=4, mid_dim=64,
        out_dim=16,             # cfg.embed_dim (output of out_proj)
        num_layers=2, sample_step=4, init_std=0.02,
    )
    key = jax.random.PRNGKey(0)
    kx, kp = jax.random.split(key)
    x = jax.random.normal(kx, (2, cfg["in_channels"],
                               cfg["image_size"], cfg["image_size"]),
                          dtype=jnp.float32)
    params = init_params(kp, cfg)

    @jax.jit
    def run(params, x):
        return wmtc_encoder_forward(params, x, cfg)

    out = jax.block_until_ready(run(params, x))
    assert out.shape == (2, cfg["sample_step"], cfg["out_dim"]), out.shape
    assert bool(jnp.all(jnp.isfinite(out)))
    print("KERNEL_OK")
</pallas_src>

<mosaic_0001>
module attributes {stable_mosaic.version = 11 : i64} {
  func.func @_fused_encoder_kernel(%arg0: i32, %arg1: memref<1x4x256xf32, #tpu.memory_space<vmem>>, %arg2: memref<256x32xbf16, #tpu.memory_space<vmem>>, %arg3: memref<1x32xf32, #tpu.memory_space<vmem>>, %arg4: memref<4x32xf32, #tpu.memory_space<vmem>>, %arg5: memref<4x32xf32, #tpu.memory_space<vmem>>, %arg6: memref<2x1x32xf32, #tpu.memory_space<vmem>>, %arg7: memref<2x1x32xf32, #tpu.memory_space<vmem>>, %arg8: memref<2x32x96xbf16, #tpu.memory_space<vmem>>, %arg9: memref<2x1x96xf32, #tpu.memory_space<vmem>>, %arg10: memref<2x32x32xbf16, #tpu.memory_space<vmem>>, %arg11: memref<2x1x32xf32, #tpu.memory_space<vmem>>, %arg12: memref<2x1x32xf32, #tpu.memory_space<vmem>>, %arg13: memref<2x1x32xf32, #tpu.memory_space<vmem>>, %arg14: memref<2x32x64xbf16, #tpu.memory_space<vmem>>, %arg15: memref<2x1x64xf32, #tpu.memory_space<vmem>>, %arg16: memref<2x64x32xbf16, #tpu.memory_space<vmem>>, %arg17: memref<2x1x32xf32, #tpu.memory_space<vmem>>, %arg18: memref<1x32xf32, #tpu.memory_space<vmem>>, %arg19: memref<1x32xf32, #tpu.memory_space<vmem>>, %arg20: memref<32x128xbf16, #tpu.memory_space<vmem>>, %arg21: memref<1x128xf32, #tpu.memory_space<vmem>>, %arg22: memref<1x4x128xf32, #tpu.memory_space<vmem>>, %arg23: memref<8x32xf32, #tpu.memory_space<vmem>>, %arg24: memref<8x96xbf16, #tpu.memory_space<vmem>>, %arg25: memref<8x32xbf16, #tpu.memory_space<vmem>>) attributes {dimension_semantics = [#tpu.dimension_semantics<parallel>], iteration_bounds = array<i64: 2>, scalar_prefetch = 0 : i64, scratch_operands = 3 : i64, tpu.core_type = #tpu.core_type<tc>, window_params = [{transform_indices = @transform_0, window_bounds = array<i64: 1, 4, 256>}, {pipeline_mode = #tpu.pipeline_mode<synchronous>, transform_indices = @transform_1, window_bounds = array<i64: 256, 32>}, {pipeline_mode = #tpu.pipeline_mode<synchronous>, transform_indices = @transform_2, window_bounds = array<i64: 1, 32>}, {pipeline_mode = #tpu.pipeline_mode<synchronous>, transform_indices = @transform_3, window_bounds = array<i64: 4, 32>}, {pipeline_mode = #tpu.pipeline_mode<synchronous>, transform_indices = @transform_4, window_bounds = array<i64: 4, 32>}, {pipeline_mode = #tpu.pipeline_mode<synchronous>, transform_indices = @transform_5, window_bounds = array<i64: 2, 1, 32>}, {pipeline_mode = #tpu.pipeline_mode<synchronous>, transform_indices = @transform_6, window_bounds = array<i64: 2, 1, 32>}, {pipeline_mode = #tpu.pipeline_mode<synchronous>, transform_indices = @transform_7, window_bounds = array<i64: 2, 32, 96>}, {pipeline_mode = #tpu.pipeline_mode<synchronous>, transform_indices = @transform_8, window_bounds = array<i64: 2, 1, 96>}, {pipeline_mode = #tpu.pipeline_mode<synchronous>, transform_indices = @transform_9, window_bounds = array<i64: 2, 32, 32>}, {pipeline_mode = #tpu.pipeline_mode<synchronous>, transform_indices = @transform_10, window_bounds = array<i64: 2, 1, 32>}, {pipeline_mode = #tpu.pipeline_mode<synchronous>, transform_indices = @transform_11, window_bounds = array<i64: 2, 1, 32>}, {pipeline_mode = #tpu.pipeline_mode<synchronous>, transform_indices = @transform_12, window_bounds = array<i64: 2, 1, 32>}, {pipeline_mode = #tpu.pipeline_mode<synchronous>, transform_indices = @transform_13, window_bounds = array<i64: 2, 32, 64>}, {pipeline_mode = #tpu.pipeline_mode<synchronous>, transform_indices = @transform_14, window_bounds = array<i64: 2, 1, 64>}, {pipeline_mode = #tpu.pipeline_mode<synchronous>, transform_indices = @transform_15, window_bounds = array<i64: 2, 64, 32>}, {pipeline_mode = #tpu.pipeline_mode<synchronous>, transform_indices = @transform_16, window_bounds = array<i64: 2, 1, 32>}, {pipeline_mode = #tpu.pipeline_mode<synchronous>, transform_indices = @transform_17, window_bounds = array<i64: 1, 32>}, {pipeline_mode = #tpu.pipeline_mode<synchronous>, transform_indices = @transform_18, window_bounds = array<i64: 1, 32>}, {pipeline_mode = #tpu.pipeline_mode<synchronous>, transform_indices = @transform_19, window_bounds = array<i64: 32, 128>}, {pipeline_mode = #tpu.pipeline_mode<synchronous>, transform_indices = @transform_20, window_bounds = array<i64: 1, 128>}, {transform_indices = @transform_21, window_bounds = array<i64: 1, 4, 128>}]} {
    %c0 = arith.constant 0 : index
    %c0_0 = arith.constant 0 : index
    %c0_1 = arith.constant 0 : index
    %0 = vector.load %arg1[%c0, %c0_0, %c0_1] : memref<1x4x256xf32, #tpu.memory_space<vmem>>, vector<1x4x256xf32>
    %1 = vector.shape_cast %0 : vector<1x4x256xf32> to vector<4x256xf32>
    %2 = arith.truncf %1 : vector<4x256xf32> to vector<4x256xbf16>
    %c0_2 = arith.constant 0 : index
    %c0_3 = arith.constant 0 : index
    %3 = vector.load %arg2[%c0_2, %c0_3] : memref<256x32xbf16, #tpu.memory_space<vmem>>, vector<256x32xbf16>
    %cst = arith.constant dense<0.000000e+00> : vector<4x32xf32>
    %4 = tpu.matmul %2, %3, %cst {dimension_numbers = #tpu.dot_dimension_numbers<[1], [0], [0], [1], [0, 0, 1, 1], [], []>} : vector<4x256xbf16>, vector<256x32xbf16>, vector<4x32xf32> -> vector<4x32xf32>
    %c0_4 = arith.constant 0 : index
    %c0_5 = arith.constant 0 : index
    %5 = vector.load %arg3[%c0_4, %c0_5] : memref<1x32xf32, #tpu.memory_space<vmem>>, vector<1x32xf32>
    %6 = vector.broadcast %5 : vector<1x32xf32> to vector<4x32xf32>
    %7 = arith.addf %4, %6 : vector<4x32xf32>
    %c0_6 = arith.constant 0 : index
    %c0_7 = arith.constant 0 : index
    %8 = vector.load %arg4[%c0_6, %c0_7] : memref<4x32xf32, #tpu.memory_space<vmem>>, vector<4x32xf32>
    %c0_8 = arith.constant 0 : index
    %c0_9 = arith.constant 0 : index
    %9 = vector.load %arg5[%c0_8, %c0_9] : memref<4x32xf32, #tpu.memory_space<vmem>>, vector<4x32xf32>
    %10 = arith.addf %8, %9 : vector<4x32xf32>
    %c0_10 = arith.constant 0 : index
    %c0_11 = arith.constant 0 : index
    %11 = vector.load %arg23[%c0_10, %c0_11] : memref<8x32xf32, #tpu.memory_space<vmem>>, vector<4x32xf32>
    tpu.vector_store %arg23[%c0_10, %c0_11], %10 {strides = array<i32>} : memref<8x32xf32, #tpu.memory_space<vmem>>, vector<4x32xf32>,
    %c4 = arith.constant 4 : index
    %c0_12 = arith.constant 0 : index
    %12 = vector.load %arg23[%c4, %c0_12] : memref<8x32xf32, #tpu.memory_space<vmem>>, vector<4x32xf32>
    tpu.vector_store %arg23[%c4, %c0_12], %7 {strides = array<i32>} : memref<8x32xf32, #tpu.memory_space<vmem>>, vector<4x32xf32>,
    %c0_13 = arith.constant 0 : index
    %c0_14 = arith.constant 0 : index
    %13 = vector.load %arg23[%c0_13, %c0_14] : memref<8x32xf32, #tpu.memory_space<vmem>>, vector<8x32xf32>
    %c0_15 = arith.constant 0 : index
    %c0_16 = arith.constant 0 : index
    %c0_17 = arith.constant 0 : index
    %14 = vector.load %arg6[%c0_15, %c0_16, %c0_17] : memref<2x1x32xf32, #tpu.memory_space<vmem>>, vector<1x1x32xf32>
    %15 = vector.shape_cast %14 : vector<1x1x32xf32> to vector<1x32xf32>
    %c0_18 = arith.constant 0 : index
    %c0_19 = arith.constant 0 : index
    %c0_20 = arith.constant 0 : index
    %16 = vector.load %arg7[%c0_18, %c0_19, %c0_20] : memref<2x1x32xf32, #tpu.memory_space<vmem>>, vector<1x1x32xf32>
    %17 = vector.shape_cast %16 : vector<1x1x32xf32> to vector<1x32xf32>
    %cst_21 = arith.constant dense<0.000000e+00> : vector<8xf32>
    %18 = vector.multi_reduction <add>, %13, %cst_21 [1] : vector<8x32xf32> to vector<8xf32>
    %19 = vector.shape_cast %18 : vector<8xf32> to vector<8x1xf32>
    %cst_22 = arith.constant 3.200000e+01 : f32
    %20 = vector.broadcast %cst_22 : f32 to vector<8x1xf32>
    %21 = arith.divf %19, %20 : vector<8x1xf32>
    %22 = vector.broadcast %21 : vector<8x1xf32> to vector<8x32xf32>
    %23 = arith.subf %13, %22 : vector<8x32xf32>
    %24 = arith.mulf %23, %23 : vector<8x32xf32>
    %cst_23 = arith.constant dense<0.000000e+00> : vector<8xf32>
    %25 = vector.multi_reduction <add>, %24, %cst_23 [1] : vector<8x32xf32> to vector<8xf32>
    %26 = vector.shape_cast %25 : vector<8xf32> to vector<8x1xf32>
    %cst_24 = arith.constant 3.200000e+01 : f32
    %27 = vector.broadcast %cst_24 : f32 to vector<8x1xf32>
    %28 = arith.divf %26, %27 : vector<8x1xf32>
    %cst_25 = arith.constant 9.99999974E-6 : f32
    %29 = vector.broadcast %cst_25 : f32 to vector<8x1xf32>
    %30 = arith.addf %28, %29 : vector<8x1xf32>
    %31 = math.rsqrt %30 : vector<8x1xf32>
    %32 = vector.broadcast %31 : vector<8x1xf32> to vector<8x32xf32>
    %33 = arith.mulf %23, %32 : vector<8x32xf32>
    %34 = vector.broadcast %15 : vector<1x32xf32> to vector<8x32xf32>
    %35 = arith.mulf %33, %34 : vector<8x32xf32>
    %36 = vector.broadcast %17 : vector<1x32xf32> to vector<8x32xf32>
    %37 = arith.addf %35, %36 : vector<8x32xf32>
    %38 = arith.truncf %37 : vector<8x32xf32> to vector<8x32xbf16>
    %c0_26 = arith.constant 0 : index
    %c0_27 = arith.constant 0 : index
    %c0_28 = arith.constant 0 : index
    %39 = vector.load %arg8[%c0_26, %c0_27, %c0_28] : memref<2x32x96xbf16, #tpu.memory_space<vmem>>, vector<1x32x96xbf16>
    %40 = vector.shape_cast %39 : vector<1x32x96xbf16> to vector<32x96xbf16>
    %cst_29 = arith.constant dense<0.000000e+00> : vector<8x96xf32>
    %41 = tpu.matmul %38, %40, %cst_29 {dimension_numbers = #tpu.dot_dimension_numbers<[1], [0], [0], [1], [0, 0, 1, 1], [], []>} : vector<8x32xbf16>, vector<32x96xbf16>, vector<8x96xf32> -> vector<8x96xf32>
    %c0_30 = arith.constant 0 : index
    %c0_31 = arith.constant 0 : index
    %c0_32 = arith.constant 0 : index
    %42 = vector.load %arg9[%c0_30, %c0_31, %c0_32] : memref<2x1x96xf32, #tpu.memory_space<vmem>>, vector<1x1x96xf32>
    %43 = vector.shape_cast %42 : vector<1x1x96xf32> to vector<1x96xf32>
    %44 = vector.broadcast %43 : vector<1x96xf32> to vector<8x96xf32>
    %45 = arith.addf %41, %44 : vector<8x96xf32>
    %46 = arith.truncf %45 : vector<8x96xf32> to vector<8x96xbf16>
    %c0_33 = arith.constant 0 : index
    %c0_34 = arith.constant 0 : index
    %47 = vector.load %arg24[%c0_33, %c0_34] : memref<8x96xbf16, #tpu.memory_space<vmem>>, vector<8x96xbf16>
    tpu.vector_store %arg24[%c0_33, %c0_34], %46 {strides = array<i32>} : memref<8x96xbf16, #tpu.memory_space<vmem>>, vector<8x96xbf16>,
    %c0_35 = arith.constant 0 : index
    %c0_36 = arith.constant 0 : index
    %48 = vector.load %arg24[%c0_35, %c0_36] : memref<8x96xbf16, #tpu.memory_space<vmem>>, vector<8x8xbf16>
    %49 = vector.shape_cast %48 : vector<8x8xbf16> to vector<1x8x8xbf16>
    %c0_37 = arith.constant 0 : index
    %c32 = arith.constant 32 : index
    %50 = vector.load %arg24[%c0_37, %c32] : memref<8x96xbf16, #tpu.memory_space<vmem>>, vector<8x8xbf16>
    %51 = vector.shape_cast %50 : vector<8x8xbf16> to vector<1x8x8xbf16>
    %c0_38 = arith.constant 0 : index
    %c64 = arith.constant 64 : index
    %52 = vector.load %arg24[%c0_38, %c64] : memref<8x96xbf16, #tpu.memory_space<vmem>>, vector<8x8xbf16>
    %53 = vector.shape_cast %52 : vector<8x8xbf16> to vector<1x8x8xbf16>
    "tpu.trace_start"() <{level = 10 : i32, message = "bqd,bkd->bqk"}> : () -> ()
    %cst_39 = arith.constant dense<0.000000e+00> : vector<1x8x8xf32>
    %54 = tpu.matmul %49, %51, %cst_39 {dimension_numbers = #tpu.dot_dimension_numbers<[2], [2], [1], [1], [0, 0, 0, 1, 1, 1], [0], [0]>} : vector<1x8x8xbf16>, vector<1x8x8xbf16>, vector<1x8x8xf32> -> vector<1x8x8xf32>
    "tpu.trace_stop"() : () -> ()
    %cst_40 = arith.constant 0.353553385 : f32
    %55 = vector.broadcast %cst_40 : f32 to vector<1x8x8xf32>
    %56 = arith.mulf %54, %55 : vector<1x8x8xf32>
    %cst_41 = arith.constant dense<0xFF800000> : vector<1x8xf32>
    %57 = vector.multi_reduction <maximumf>, %56, %cst_41 [2] : vector<1x8x8xf32> to vector<1x8xf32>
    %58 = vector.shape_cast %57 : vector<1x8xf32> to vector<1x8x1xf32>
    %59 = vector.broadcast %58 : vector<1x8x1xf32> to vector<1x8x8xf32>
    %60 = arith.subf %56, %59 : vector<1x8x8xf32>
    %61 = math.exp %60 : vector<1x8x8xf32>
    %cst_42 = arith.constant dense<0.000000e+00> : vector<1x8xf32>
    %62 = vector.multi_reduction <add>, %61, %cst_42 [2] : vector<1x8x8xf32> to vector<1x8xf32>
    %63 = vector.shape_cast %62 : vector<1x8xf32> to vector<1x8x1xf32>
    %64 = tpu.reciprocal %63 {approx = true} : vector<1x8x1xf32> -> vector<1x8x1xf32>
    %65 = vector.broadcast %64 : vector<1x8x1xf32> to vector<1x8x8xf32>
    %66 = arith.mulf %61, %65 : vector<1x8x8xf32>
    %67 = arith.truncf %66 : vector<1x8x8xf32> to vector<1x8x8xbf16>
    "tpu.trace_start"() <{level = 10 : i32, message = "bqk,bkd->bqd"}> : () -> ()
    %cst_43 = arith.constant dense<0.000000e+00> : vector<1x8x8xf32>
    %68 = tpu.matmul %67, %53, %cst_43 {dimension_numbers = #tpu.dot_dimension_numbers<[2], [1], [1], [2], [0, 0, 0, 1, 1, 2], [0], [0]>} : vector<1x8x8xbf16>, vector<1x8x8xbf16>, vector<1x8x8xf32> -> vector<1x8x8xf32>
    "tpu.trace_stop"() : () -> ()
    %69 = vector.shape_cast %68 : vector<1x8x8xf32> to vector<8x8xf32>
    %70 = arith.truncf %69 : vector<8x8xf32> to vector<8x8xbf16>
    %c0_44 = arith.constant 0 : index
    %c0_45 = arith.constant 0 : index
    %71 = vector.load %arg25[%c0_44, %c0_45] : memref<8x32xbf16, #tpu.memory_space<vmem>>, vector<8x8xbf16>
    tpu.vector_store %arg25[%c0_44, %c0_45], %70 {strides = array<i32>} : memref<8x32xbf16, #tpu.memory_space<vmem>>, vector<8x8xbf16>,
    %c0_46 = arith.constant 0 : index
    %c8 = arith.constant 8 : index
    %72 = vector.load %arg24[%c0_46, %c8] : memref<8x96xbf16, #tpu.memory_space<vmem>>, vector<8x8xbf16>
    %73 = vector.shape_cast %72 : vector<8x8xbf16> to vector<1x8x8xbf16>
    %c0_47 = arith.constant 0 : index
    %c40 = arith.constant 40 : index
    %74 = vector.load %arg24[%c0_47, %c40] : memref<8x96xbf16, #tpu.memory_space<vmem>>, vector<8x8xbf16>
    %75 = vector.shape_cast %74 : vector<8x8xbf16> to vector<1x8x8xbf16>
    %c0_48 = arith.constant 0 : index
    %c72 = arith.constant 72 : index
    %76 = vector.load %arg24[%c0_48, %c72] : memref<8x96xbf16, #tpu.memory_space<vmem>>, vector<8x8xbf16>
    %77 = vector.shape_cast %76 : vector<8x8xbf16> to vector<1x8x8xbf16>
    "tpu.trace_start"() <{level = 10 : i32, message = "bqd,bkd->bqk"}> : () -> ()
    %cst_49 = arith.constant dense<0.000000e+00> : vector<1x8x8xf32>
    %78 = tpu.matmul %73, %75, %cst_49 {dimension_numbers = #tpu.dot_dimension_numbers<[2], [2], [1], [1], [0, 0, 0, 1, 1, 1], [0], [0]>} : vector<1x8x8xbf16>, vector<1x8x8xbf16>, vector<1x8x8xf32> -> vector<1x8x8xf32>
    "tpu.trace_stop"() : () -> ()
    %cst_50 = arith.constant 0.353553385 : f32
    %79 = vector.broadcast %cst_50 : f32 to vector<1x8x8xf32>
    %80 = arith.mulf %78, %79 : vector<1x8x8xf32>
    %cst_51 = arith.constant dense<0xFF800000> : vector<1x8xf32>
    %81 = vector.multi_reduction <maximumf>, %80, %cst_51 [2] : vector<1x8x8xf32> to vector<1x8xf32>
    %82 = vector.shape_cast %81 : vector<1x8xf32> to vector<1x8x1xf32>
    %83 = vector.broadcast %82 : vector<1x8x1xf32> to vector<1x8x8xf32>
    %84 = arith.subf %80, %83 : vector<1x8x8xf32>
    %85 = math.exp %84 : vector<1x8x8xf32>
    %cst_52 = arith.constant dense<0.000000e+00> : vector<1x8xf32>
    %86 = vector.multi_reduction <add>, %85, %cst_52 [2] : vector<1x8x8xf32> to vector<1x8xf32>
    %87 = vector.shape_cast %86 : vector<1x8xf32> to vector<1x8x1xf32>
    %88 = tpu.reciprocal %87 {approx = true} : vector<1x8x1xf32> -> vector<1x8x1xf32>
    %89 = vector.broadcast %88 : vector<1x8x1xf32> to vector<1x8x8xf32>
    %90 = arith.mulf %85, %89 : vector<1x8x8xf32>
    %91 = arith.truncf %90 : vector<1x8x8xf32> to vector<1x8x8xbf16>
    "tpu.trace_start"() <{level = 10 : i32, message = "bqk,bkd->bqd"}> : () -> ()
    %cst_53 = arith.constant dense<0.000000e+00> : vector<1x8x8xf32>
    %92 = tpu.matmul %91, %77, %cst_53 {dimension_numbers = #tpu.dot_dimension_numbers<[2], [1], [1], [2], [0, 0, 0, 1, 1, 2], [0], [0]>} : vector<1x8x8xbf16>, vector<1x8x8xbf16>, vector<1x8x8xf32> -> vector<1x8x8xf32>
    "tpu.trace_stop"() : () -> ()
    %93 = vector.shape_cast %92 : vector<1x8x8xf32> to vector<8x8xf32>
    %94 = arith.truncf %93 : vector<8x8xf32> to vector<8x8xbf16>
    %c0_54 = arith.constant 0 : index
    %c8_55 = arith.constant 8 : index
    %95 = vector.load %arg25[%c0_54, %c8_55] : memref<8x32xbf16, #tpu.memory_space<vmem>>, vector<8x8xbf16>
    tpu.vector_store %arg25[%c0_54, %c8_55], %94 {strides = array<i32>} : memref<8x32xbf16, #tpu.memory_space<vmem>>, vector<8x8xbf16>,
    %c0_56 = arith.constant 0 : index
    %c16 = arith.constant 16 : index
    %96 = vector.load %arg24[%c0_56, %c16] : memref<8x96xbf16, #tpu.memory_space<vmem>>, vector<8x8xbf16>
    %97 = vector.shape_cast %96 : vector<8x8xbf16> to vector<1x8x8xbf16>
    %c0_57 = arith.constant 0 : index
    %c48 = arith.constant 48 : index
    %98 = vector.load %arg24[%c0_57, %c48] : memref<8x96xbf16, #tpu.memory_space<vmem>>, vector<8x8xbf16>
    %99 = vector.shape_cast %98 : vector<8x8xbf16> to vector<1x8x8xbf16>
    %c0_58 = arith.constant 0 : index
    %c80 = arith.constant 80 : index
    %100 = vector.load %arg24[%c0_58, %c80] : memref<8x96xbf16, #tpu.memory_space<vmem>>, vector<8x8xbf16>
    %101 = vector.shape_cast %100 : vector<8x8xbf16> to vector<1x8x8xbf16>
    "tpu.trace_start"() <{level = 10 : i32, message = "bqd,bkd->bqk"}> : () -> ()
    %cst_59 = arith.constant dense<0.000000e+00> : vector<1x8x8xf32>
    %102 = tpu.matmul %97, %99, %cst_59 {dimension_numbers = #tpu.dot_dimension_numbers<[2], [2], [1], [1], [0, 0, 0, 1, 1, 1], [0], [0]>} : vector<1x8x8xbf16>, vector<1x8x8xbf16>, vector<1x8x8xf32> -> vector<1x8x8xf32>
    "tpu.trace_stop"() : () -> ()
    %cst_60 = arith.constant 0.353553385 : f32
    %103 = vector.broadcast %cst_60 : f32 to vector<1x8x8xf32>
    %104 = arith.mulf %102, %103 : vector<1x8x8xf32>
    %cst_61 = arith.constant dense<0xFF800000> : vector<1x8xf32>
    %105 = vector.multi_reduction <maximumf>, %104, %cst_61 [2] : vector<1x8x8xf32> to vector<1x8xf32>
    %106 = vector.shape_cast %105 : vector<1x8xf32> to vector<1x8x1xf32>
    %107 = vector.broadcast %106 : vector<1x8x1xf32> to vector<1x8x8xf32>
    %108 = arith.subf %104, %107 : vector<1x8x8xf32>
    %109 = math.exp %108 : vector<1x8x8xf32>
    %cst_62 = arith.constant dense<0.000000e+00> : vector<1x8xf32>
    %110 = vector.multi_reduction <add>, %109, %cst_62 [2] : vector<1x8x8xf32> to vector<1x8xf32>
    %111 = vector.shape_cast %110 : vector<1x8xf32> to vector<1x8x1xf32>
    %112 = tpu.reciprocal %111 {approx = true} : vector<1x8x1xf32> -> vector<1x8x1xf32>
    %113 = vector.broadcast %112 : vector<1x8x1xf32> to vector<1x8x8xf32>
    %114 = arith.mulf %109, %113 : vector<1x8x8xf32>
    %115 = arith.truncf %114 : vector<1x8x8xf32> to vector<1x8x8xbf16>
    "tpu.trace_start"() <{level = 10 : i32, message = "bqk,bkd->bqd"}> : () -> ()
    %cst_63 = arith.constant dense<0.000000e+00> : vector<1x8x8xf32>
    %116 = tpu.matmul %115, %101, %cst_63 {dimension_numbers = #tpu.dot_dimension_numbers<[2], [1], [1], [2], [0, 0, 0, 1, 1, 2], [0], [0]>} : vector<1x8x8xbf16>, vector<1x8x8xbf16>, vector<1x8x8xf32> -> vector<1x8x8xf32>
    "tpu.trace_stop"() : () -> ()
    %117 = vector.shape_cast %116 : vector<1x8x8xf32> to vector<8x8xf32>
    %118 = arith.truncf %117 : vector<8x8xf32> to vector<8x8xbf16>
    %c0_64 = arith.constant 0 : index
    %c16_65 = arith.constant 16 : index
    %119 = vector.load %arg25[%c0_64, %c16_65] : memref<8x32xbf16, #tpu.memory_space<vmem>>, vector<8x8xbf16>
    tpu.vector_store %arg25[%c0_64, %c16_65], %118 {strides = array<i32>} : memref<8x32xbf16, #tpu.memory_space<vmem>>, vector<8x8xbf16>,
    %c0_66 = arith.constant 0 : index
    %c24 = arith.constant 24 : index
    %120 = vector.load %arg24[%c0_66, %c24] : memref<8x96xbf16, #tpu.memory_space<vmem>>, vector<8x8xbf16>
    %121 = vector.shape_cast %120 : vector<8x8xbf16> to vector<1x8x8xbf16>
    %c0_67 = arith.constant 0 : index
    %c56 = arith.constant 56 : index
    %122 = vector.load %arg24[%c0_67, %c56] : memref<8x96xbf16, #tpu.memory_space<vmem>>, vector<8x8xbf16>
    %123 = vector.shape_cast %122 : vector<8x8xbf16> to vector<1x8x8xbf16>
    %c0_68 = arith.constant 0 : index
    %c88 = arith.constant 88 : index
    %124 = vector.load %arg24[%c0_68, %c88] : memref<8x96xbf16, #tpu.memory_space<vmem>>, vector<8x8xbf16>
    %125 = vector.shape_cast %124 : vector<8x8xbf16> to vector<1x8x8xbf16>
    "tpu.trace_start"() <{level = 10 : i32, message = "bqd,bkd->bqk"}> : () -> ()
    %cst_69 = arith.constant dense<0.000000e+00> : vector<1x8x8xf32>
    %126 = tpu.matmul %121, %123, %cst_69 {dimension_numbers = #tpu.dot_dimension_numbers<[2], [2], [1], [1], [0, 0, 0, 1, 1, 1], [0], [0]>} : vector<1x8x8xbf16>, vector<1x8x8xbf16>, vector<1x8x8xf32> -> vector<1x8x8xf32>
    "tpu.trace_stop"() : () -> ()
    %cst_70 = arith.constant 0.353553385 : f32
    %127 = vector.broadcast %cst_70 : f32 to vector<1x8x8xf32>
    %128 = arith.mulf %126, %127 : vector<1x8x8xf32>
    %cst_71 = arith.constant dense<0xFF800000> : vector<1x8xf32>
    %129 = vector.multi_reduction <maximumf>, %128, %cst_71 [2] : vector<1x8x8xf32> to vector<1x8xf32>
    %130 = vector.shape_cast %129 : vector<1x8xf32> to vector<1x8x1xf32>
    %131 = vector.broadcast %130 : vector<1x8x1xf32> to vector<1x8x8xf32>
    %132 = arith.subf %128, %131 : vector<1x8x8xf32>
    %133 = math.exp %132 : vector<1x8x8xf32>
    %cst_72 = arith.constant dense<0.000000e+00> : vector<1x8xf32>
    %134 = vector.multi_reduction <add>, %133, %cst_72 [2] : vector<1x8x8xf32> to vector<1x8xf32>
    %135 = vector.shape_cast %134 : vector<1x8xf32> to vector<1x8x1xf32>
    %136 = tpu.reciprocal %135 {approx = true} : vector<1x8x1xf32> -> vector<1x8x1xf32>
    %137 = vector.broadcast %136 : vector<1x8x1xf32> to vector<1x8x8xf32>
    %138 = arith.mulf %133, %137 : vector<1x8x8xf32>
    %139 = arith.truncf %138 : vector<1x8x8xf32> to vector<1x8x8xbf16>
    "tpu.trace_start"() <{level = 10 : i32, message = "bqk,bkd->bqd"}> : () -> ()
    %cst_73 = arith.constant dense<0.000000e+00> : vector<1x8x8xf32>
    %140 = tpu.matmul %139, %125, %cst_73 {dimension_numbers = #tpu.dot_dimension_numbers<[2], [1], [1], [2], [0, 0, 0, 1, 1, 2], [0], [0]>} : vector<1x8x8xbf16>, vector<1x8x8xbf16>, vector<1x8x8xf32> -> vector<1x8x8xf32>
    "tpu.trace_stop"() : () -> ()
    %141 = vector.shape_cast %140 : vector<1x8x8xf32> to vector<8x8xf32>
    %142 = arith.truncf %141 : vector<8x8xf32> to vector<8x8xbf16>
    %c0_74 = arith.constant 0 : index
    %c24_75 = arith.constant 24 : index
    %143 = vector.load %arg25[%c0_74, %c24_75] : memref<8x32xbf16, #tpu.memory_space<vmem>>, vector<8x8xbf16>
    tpu.vector_store %arg25[%c0_74, %c24_75], %142 {strides = array<i32>} : memref<8x32xbf16, #tpu.memory_space<vmem>>, vector<8x8xbf16>,
    %c0_76 = arith.constant 0 : index
    %c0_77 = arith.constant 0 : index
    %144 = vector.load %arg25[%c0_76, %c0_77] : memref<8x32xbf16, #tpu.memory_space<vmem>>, vector<8x32xbf16>
    %c0_78 = arith.constant 0 : index
    %c0_79 = arith.constant 0 : index
    %c0_80 = arith.constant 0 : index
    %145 = vector.load %arg10[%c0_78, %c0_79, %c0_80] : memref<2x32x32xbf16, #tpu.memory_space<vmem>>, vector<1x32x32xbf16>
    %146 = vector.shape_cast %145 : vector<1x32x32xbf16> to vector<32x32xbf16>
    %cst_81 = arith.constant dense<0.000000e+00> : vector<8x32xf32>
    %147 = tpu.matmul %144, %146, %cst_81 {dimension_numbers = #tpu.dot_dimension_numbers<[1], [0], [0], [1], [0, 0, 1, 1], [], []>} : vector<8x32xbf16>, vector<32x32xbf16>, vector<8x32xf32> -> vector<8x32xf32>
    %148 = arith.addf %13, %147 : vector<8x32xf32>
    %c0_82 = arith.constant 0 : index
    %c0_83 = arith.constant 0 : index
    %c0_84 = arith.constant 0 : index
    %149 = vector.load %arg11[%c0_82, %c0_83, %c0_84] : memref<2x1x32xf32, #tpu.memory_space<vmem>>, vector<1x1x32xf32>
    %150 = vector.shape_cast %149 : vector<1x1x32xf32> to vector<1x32xf32>
    %151 = vector.broadcast %150 : vector<1x32xf32> to vector<8x32xf32>
    %152 = arith.addf %148, %151 : vector<8x32xf32>
    %c0_85 = arith.constant 0 : index
    %c0_86 = arith.constant 0 : index
    %c0_87 = arith.constant 0 : index
    %153 = vector.load %arg12[%c0_85, %c0_86, %c0_87] : memref<2x1x32xf32, #tpu.memory_space<vmem>>, vector<1x1x32xf32>
    %154 = vector.shape_cast %153 : vector<1x1x32xf32> to vector<1x32xf32>
    %c0_88 = arith.constant 0 : index
    %c0_89 = arith.constant 0 : index
    %c0_90 = arith.constant 0 : index
    %155 = vector.load %arg13[%c0_88, %c0_89, %c0_90] : memref<2x1x32xf32, #tpu.memory_space<vmem>>, vector<1x1x32xf32>
    %156 = vector.shape_cast %155 : vector<1x1x32xf32> to vector<1x32xf32>
    %cst_91 = arith.constant dense<0.000000e+00> : vector<8xf32>
    %157 = vector.multi_reduction <add>, %152, %cst_91 [1] : vector<8x32xf32> to vector<8xf32>
    %158 = vector.shape_cast %157 : vector<8xf32> to vector<8x1xf32>
    %cst_92 = arith.constant 3.200000e+01 : f32
    %159 = vector.broadcast %cst_92 : f32 to vector<8x1xf32>
    %160 = arith.divf %158, %159 : vector<8x1xf32>
    %161 = vector.broadcast %160 : vector<8x1xf32> to vector<8x32xf32>
    %162 = arith.subf %152, %161 : vector<8x32xf32>
    %163 = arith.mulf %162, %162 : vector<8x32xf32>
    %cst_93 = arith.constant dense<0.000000e+00> : vector<8xf32>
    %164 = vector.multi_reduction <add>, %163, %cst_93 [1] : vector<8x32xf32> to vector<8xf32>
    %165 = vector.shape_cast %164 : vector<8xf32> to vector<8x1xf32>
    %cst_94 = arith.constant 3.200000e+01 : f32
    %166 = vector.broadcast %cst_94 : f32 to vector<8x1xf32>
    %167 = arith.divf %165, %166 : vector<8x1xf32>
    %cst_95 = arith.constant 9.99999974E-6 : f32
    %168 = vector.broadcast %cst_95 : f32 to vector<8x1xf32>
    %169 = arith.addf %167, %168 : vector<8x1xf32>
    %170 = math.rsqrt %169 : vector<8x1xf32>
    %171 = vector.broadcast %170 : vector<8x1xf32> to vector<8x32xf32>
    %172 = arith.mulf %162, %171 : vector<8x32xf32>
    %173 = vector.broadcast %154 : vector<1x32xf32> to vector<8x32xf32>
    %174 = arith.mulf %172, %173 : vector<8x32xf32>
    %175 = vector.broadcast %156 : vector<1x32xf32> to vector<8x32xf32>
    %176 = arith.addf %174, %175 : vector<8x32xf32>
    %177 = arith.truncf %176 : vector<8x32xf32> to vector<8x32xbf16>
    %c0_96 = arith.constant 0 : index
    %c0_97 = arith.constant 0 : index
    %c0_98 = arith.constant 0 : index
    %178 = vector.load %arg14[%c0_96, %c0_97, %c0_98] : memref<2x32x64xbf16, #tpu.memory_space<vmem>>, vector<1x32x64xbf16>
    %179 = vector.shape_cast %178 : vector<1x32x64xbf16> to vector<32x64xbf16>
    %cst_99 = arith.constant dense<0.000000e+00> : vector<8x64xf32>
    %180 = tpu.matmul %177, %179, %cst_99 {dimension_numbers = #tpu.dot_dimension_numbers<[1], [0], [0], [1], [0, 0, 1, 1], [], []>} : vector<8x32xbf16>, vector<32x64xbf16>, vector<8x64xf32> -> vector<8x64xf32>
    %c0_100 = arith.constant 0 : index
    %c0_101 = arith.constant 0 : index
    %c0_102 = arith.constant 0 : index
    %181 = vector.load %arg15[%c0_100, %c0_101, %c0_102] : memref<2x1x64xf32, #tpu.memory_space<vmem>>, vector<1x1x64xf32>
    %182 = vector.shape_cast %181 : vector<1x1x64xf32> to vector<1x64xf32>
    %183 = vector.broadcast %182 : vector<1x64xf32> to vector<8x64xf32>
    %184 = arith.addf %180, %183 : vector<8x64xf32>
    %185 = arith.negf %184 : vector<8x64xf32>
    %186 = math.exp %185 : vector<8x64xf32>
    %cst_103 = arith.constant 1.000000e+00 : f32
    %187 = vector.broadcast %cst_103 : f32 to vector<8x64xf32>
    %188 = arith.addf %187, %186 : vector<8x64xf32>
    %189 = arith.divf %187, %188 : vector<8x64xf32>
    %190 = arith.mulf %184, %189 : vector<8x64xf32>
    %191 = arith.truncf %190 : vector<8x64xf32> to vector<8x64xbf16>
    %c0_104 = arith.constant 0 : index
    %c0_105 = arith.constant 0 : index
    %c0_106 = arith.constant 0 : index
    %192 = vector.load %arg16[%c0_104, %c0_105, %c0_106] : memref<2x64x32xbf16, #tpu.memory_space<vmem>>, vector<1x64x32xbf16>
    %193 = vector.shape_cast %192 : vector<1x64x32xbf16> to vector<64x32xbf16>
    %cst_107 = arith.constant dense<0.000000e+00> : vector<8x32xf32>
    %194 = tpu.matmul %191, %193, %cst_107 {dimension_numbers = #tpu.dot_dimension_numbers<[1], [0], [0], [1], [0, 0, 1, 1], [], []>} : vector<8x64xbf16>, vector<64x32xbf16>, vector<8x32xf32> -> vector<8x32xf32>
    %195 = arith.addf %152, %194 : vector<8x32xf32>
    %c0_108 = arith.constant 0 : index
    %c0_109 = arith.constant 0 : index
    %c0_110 = arith.constant 0 : index
    %196 = vector.load %arg17[%c0_108, %c0_109, %c0_110] : memref<2x1x32xf32, #tpu.memory_space<vmem>>, vector<1x1x32xf32>
    %197 = vector.shape_cast %196 : vector<1x1x32xf32> to vector<1x32xf32>
    %198 = vector.broadcast %197 : vector<1x32xf32> to vector<8x32xf32>
    %199 = arith.addf %195, %198 : vector<8x32xf32>
    %c0_111 = arith.constant 0 : index
    %c0_112 = arith.constant 0 : index
    %200 = vector.load %arg23[%c0_111, %c0_112] : memref<8x32xf32, #tpu.memory_space<vmem>>, vector<8x32xf32>
    tpu.vector_store %arg23[%c0_111, %c0_112], %199 {strides = array<i32>} : memref<8x32xf32, #tpu.memory_space<vmem>>, vector<8x32xf32>,
    %c0_113 = arith.constant 0 : index
    %c0_114 = arith.constant 0 : index
    %201 = vector.load %arg23[%c0_113, %c0_114] : memref<8x32xf32, #tpu.memory_space<vmem>>, vector<8x32xf32>
    %c1 = arith.constant 1 : index
    %c0_115 = arith.constant 0 : index
    %c0_116 = arith.constant 0 : index
    %202 = vector.load %arg6[%c1, %c0_115, %c0_116] : memref<2x1x32xf32, #tpu.memory_space<vmem>>, vector<1x1x32xf32>
    %203 = vector.shape_cast %202 : vector<1x1x32xf32> to vector<1x32xf32>
    %c1_117 = arith.constant 1 : index
    %c0_118 = arith.constant 0 : index
    %c0_119 = arith.constant 0 : index
    %204 = vector.load %arg7[%c1_117, %c0_118, %c0_119] : memref<2x1x32xf32, #tpu.memory_space<vmem>>, vector<1x1x32xf32>
    %205 = vector.shape_cast %204 : vector<1x1x32xf32> to vector<1x32xf32>
    %cst_120 = arith.constant dense<0.000000e+00> : vector<8xf32>
    %206 = vector.multi_reduction <add>, %201, %cst_120 [1] : vector<8x32xf32> to vector<8xf32>
    %207 = vector.shape_cast %206 : vector<8xf32> to vector<8x1xf32>
    %cst_121 = arith.constant 3.200000e+01 : f32
    %208 = vector.broadcast %cst_121 : f32 to vector<8x1xf32>
    %209 = arith.divf %207, %208 : vector<8x1xf32>
    %210 = vector.broadcast %209 : vector<8x1xf32> to vector<8x32xf32>
    %211 = arith.subf %201, %210 : vector<8x32xf32>
    %212 = arith.mulf %211, %211 : vector<8x32xf32>
    %cst_122 = arith.constant dense<0.000000e+00> : vector<8xf32>
    %213 = vector.multi_reduction <add>, %212, %cst_122 [1] : vector<8x32xf32> to vector<8xf32>
    %214 = vector.shape_cast %213 : vector<8xf32> to vector<8x1xf32>
    %cst_123 = arith.constant 3.200000e+01 : f32
    %215 = vector.broadcast %cst_123 : f32 to vector<8x1xf32>
    %216 = arith.divf %214, %215 : vector<8x1xf32>
    %cst_124 = arith.constant 9.99999974E-6 : f32
    %217 = vector.broadcast %cst_124 : f32 to vector<8x1xf32>
    %218 = arith.addf %216, %217 : vector<8x1xf32>
    %219 = math.rsqrt %218 : vector<8x1xf32>
    %220 = vector.broadcast %219 : vector<8x1xf32> to vector<8x32xf32>
    %221 = arith.mulf %211, %220 : vector<8x32xf32>
    %222 = vector.broadcast %203 : vector<1x32xf32> to vector<8x32xf32>
    %223 = arith.mulf %221, %222 : vector<8x32xf32>
    %224 = vector.broadcast %205 : vector<1x32xf32> to vector<8x32xf32>
    %225 = arith.addf %223, %224 : vector<8x32xf32>
    %226 = arith.truncf %225 : vector<8x32xf32> to vector<8x32xbf16>
    %c1_125 = arith.constant 1 : index
    %c0_126 = arith.constant 0 : index
    %c0_127 = arith.constant 0 : index
    %227 = vector.load %arg8[%c1_125, %c0_126, %c0_127] : memref<2x32x96xbf16, #tpu.memory_space<vmem>>, vector<1x32x96xbf16>
    %228 = vector.shape_cast %227 : vector<1x32x96xbf16> to vector<32x96xbf16>
    %cst_128 = arith.constant dense<0.000000e+00> : vector<8x96xf32>
    %229 = tpu.matmul %226, %228, %cst_128 {dimension_numbers = #tpu.dot_dimension_numbers<[1], [0], [0], [1], [0, 0, 1, 1], [], []>} : vector<8x32xbf16>, vector<32x96xbf16>, vector<8x96xf32> -> vector<8x96xf32>
    %c1_129 = arith.constant 1 : index
    %c0_130 = arith.constant 0 : index
    %c0_131 = arith.constant 0 : index
    %230 = vector.load %arg9[%c1_129, %c0_130, %c0_131] : memref<2x1x96xf32, #tpu.memory_space<vmem>>, vector<1x1x96xf32>
    %231 = vector.shape_cast %230 : vector<1x1x96xf32> to vector<1x96xf32>
    %232 = vector.broadcast %231 : vector<1x96xf32> to vector<8x96xf32>
    %233 = arith.addf %229, %232 : vector<8x96xf32>
    %234 = arith.truncf %233 : vector<8x96xf32> to vector<8x96xbf16>
    %c0_132 = arith.constant 0 : index
    %c0_133 = arith.constant 0 : index
    %235 = vector.load %arg24[%c0_132, %c0_133] : memref<8x96xbf16, #tpu.memory_space<vmem>>, vector<8x96xbf16>
    tpu.vector_store %arg24[%c0_132, %c0_133], %234 {strides = array<i32>} : memref<8x96xbf16, #tpu.memory_space<vmem>>, vector<8x96xbf16>,
    %c0_134 = arith.constant 0 : index
    %c0_135 = arith.constant 0 : index
    %236 = vector.load %arg24[%c0_134, %c0_135] : memref<8x96xbf16, #tpu.memory_space<vmem>>, vector<8x8xbf16>
    %237 = vector.shape_cast %236 : vector<8x8xbf16> to vector<1x8x8xbf16>
    %c0_136 = arith.constant 0 : index
    %c32_137 = arith.constant 32 : index
    %238 = vector.load %arg24[%c0_136, %c32_137] : memref<8x96xbf16, #tpu.memory_space<vmem>>, vector<8x8xbf16>
    %239 = vector.shape_cast %238 : vector<8x8xbf16> to vector<1x8x8xbf16>
    %c0_138 = arith.constant 0 : index
    %c64_139 = arith.constant 64 : index
    %240 = vector.load %arg24[%c0_138, %c64_139] : memref<8x96xbf16, #tpu.memory_space<vmem>>, vector<8x8xbf16>
    %241 = vector.shape_cast %240 : vector<8x8xbf16> to vector<1x8x8xbf16>
    "tpu.trace_start"() <{level = 10 : i32, message = "bqd,bkd->bqk"}> : () -> ()
    %cst_140 = arith.constant dense<0.000000e+00> : vector<1x8x8xf32>
    %242 = tpu.matmul %237, %239, %cst_140 {dimension_numbers = #tpu.dot_dimension_numbers<[2], [2], [1], [1], [0, 0, 0, 1, 1, 1], [0], [0]>} : vector<1x8x8xbf16>, vector<1x8x8xbf16>, vector<1x8x8xf32> -> vector<1x8x8xf32>
    "tpu.trace_stop"() : () -> ()
    %cst_141 = arith.constant 0.353553385 : f32
    %243 = vector.broadcast %cst_141 : f32 to vector<1x8x8xf32>
    %244 = arith.mulf %242, %243 : vector<1x8x8xf32>
    %cst_142 = arith.constant dense<0xFF800000> : vector<1x8xf32>
    %245 = vector.multi_reduction <maximumf>, %244, %cst_142 [2] : vector<1x8x8xf32> to vector<1x8xf32>
    %246 = vector.shape_cast %245 : vector<1x8xf32> to vector<1x8x1xf32>
    %247 = vector.broadcast %246 : vector<1x8x1xf32> to vector<1x8x8xf32>
    %248 = arith.subf %244, %247 : vector<1x8x8xf32>
    %249 = math.exp %248 : vector<1x8x8xf32>
    %cst_143 = arith.constant dense<0.000000e+00> : vector<1x8xf32>
    %250 = vector.multi_reduction <add>, %249, %cst_143 [2] : vector<1x8x8xf32> to vector<1x8xf32>
    %251 = vector.shape_cast %250 : vector<1x8xf32> to vector<1x8x1xf32>
    %252 = tpu.reciprocal %251 {approx = true} : vector<1x8x1xf32> -> vector<1x8x1xf32>
    %253 = vector.broadcast %252 : vector<1x8x1xf32> to vector<1x8x8xf32>
    %254 = arith.mulf %249, %253 : vector<1x8x8xf32>
    %255 = arith.truncf %254 : vector<1x8x8xf32> to vector<1x8x8xbf16>
    "tpu.trace_start"() <{level = 10 : i32, message = "bqk,bkd->bqd"}> : () -> ()
    %cst_144 = arith.constant dense<0.000000e+00> : vector<1x8x8xf32>
    %256 = tpu.matmul %255, %241, %cst_144 {dimension_numbers = #tpu.dot_dimension_numbers<[2], [1], [1], [2], [0, 0, 0, 1, 1, 2], [0], [0]>} : vector<1x8x8xbf16>, vector<1x8x8xbf16>, vector<1x8x8xf32> -> vector<1x8x8xf32>
    "tpu.trace_stop"() : () -> ()
    %257 = vector.shape_cast %256 : vector<1x8x8xf32> to vector<8x8xf32>
    %258 = arith.truncf %257 : vector<8x8xf32> to vector<8x8xbf16>
    %c0_145 = arith.constant 0 : index
    %c0_146 = arith.constant 0 : index
    %259 = vector.load %arg25[%c0_145, %c0_146] : memref<8x32xbf16, #tpu.memory_space<vmem>>, vector<8x8xbf16>
    tpu.vector_store %arg25[%c0_145, %c0_146], %258 {strides = array<i32>} : memref<8x32xbf16, #tpu.memory_space<vmem>>, vector<8x8xbf16>,
    %c0_147 = arith.constant 0 : index
    %c8_148 = arith.constant 8 : index
    %260 = vector.load %arg24[%c0_147, %c8_148] : memref<8x96xbf16, #tpu.memory_space<vmem>>, vector<8x8xbf16>
    %261 = vector.shape_cast %260 : vector<8x8xbf16> to vector<1x8x8xbf16>
    %c0_149 = arith.constant 0 : index
    %c40_150 = arith.constant 40 : index
    %262 = vector.load %arg24[%c0_149, %c40_150] : memref<8x96xbf16, #tpu.memory_space<vmem>>, vector<8x8xbf16>
    %263 = vector.shape_cast %262 : vector<8x8xbf16> to vector<1x8x8xbf16>
    %c0_151 = arith.constant 0 : index
    %c72_152 = arith.constant 72 : index
    %264 = vector.load %arg24[%c0_151, %c72_152] : memref<8x96xbf16, #tpu.memory_space<vmem>>, vector<8x8xbf16>
    %265 = vector.shape_cast %264 : vector<8x8xbf16> to vector<1x8x8xbf16>
    "tpu.trace_start"() <{level = 10 : i32, message = "bqd,bkd->bqk"}> : () -> ()
    %cst_153 = arith.constant dense<0.000000e+00> : vector<1x8x8xf32>
    %266 = tpu.matmul %261, %263, %cst_153 {dimension_numbers = #tpu.dot_dimension_numbers<[2], [2], [1], [1], [0, 0, 0, 1, 1, 1], [0], [0]>} : vector<1x8x8xbf16>, vector<1x8x8xbf16>, vector<1x8x8xf32> -> vector<1x8x8xf32>
    "tpu.trace_stop"() : () -> ()
    %cst_154 = arith.constant 0.353553385 : f32
    %267 = vector.broadcast %cst_154 : f32 to vector<1x8x8xf32>
    %268 = arith.mulf %266, %267 : vector<1x8x8xf32>
    %cst_155 = arith.constant dense<0xFF800000> : vector<1x8xf32>
    %269 = vector.multi_reduction <maximumf>, %268, %cst_155 [2] : vector<1x8x8xf32> to vector<1x8xf32>
    %270 = vector.shape_cast %269 : vector<1x8xf32> to vector<1x8x1xf32>
    %271 = vector.broadcast %270 : vector<1x8x1xf32> to vector<1x8x8xf32>
    %272 = arith.subf %268, %271 : vector<1x8x8xf32>
    %273 = math.exp %272 : vector<1x8x8xf32>
    %cst_156 = arith.constant dense<0.000000e+00> : vector<1x8xf32>
    %274 = vector.multi_reduction <add>, %273, %cst_156 [2] : vector<1x8x8xf32> to vector<1x8xf32>
    %275 = vector.shape_cast %274 : vector<1x8xf32> to vector<1x8x1xf32>
    %276 = tpu.reciprocal %275 {approx = true} : vector<1x8x1xf32> -> vector<1x8x1xf32>
    %277 = vector.broadcast %276 : vector<1x8x1xf32> to vector<1x8x8xf32>
    %278 = arith.mulf %273, %277 : vector<1x8x8xf32>
    %279 = arith.truncf %278 : vector<1x8x8xf32> to vector<1x8x8xbf16>
    "tpu.trace_start"() <{level = 10 : i32, message = "bqk,bkd->bqd"}> : () -> ()
    %cst_157 = arith.constant dense<0.000000e+00> : vector<1x8x8xf32>
    %280 = tpu.matmul %279, %265, %cst_157 {dimension_numbers = #tpu.dot_dimension_numbers<[2], [1], [1], [2], [0, 0, 0, 1, 1, 2], [0], [0]>} : vector<1x8x8xbf16>, vector<1x8x8xbf16>, vector<1x8x8xf32> -> vector<1x8x8xf32>
    "tpu.trace_stop"() : () -> ()
    %281 = vector.shape_cast %280 : vector<1x8x8xf32> to vector<8x8xf32>
    %282 = arith.truncf %281 : vector<8x8xf32> to vector<8x8xbf16>
    %c0_158 = arith.constant 0 : index
    %c8_159 = arith.constant 8 : index
    %283 = vector.load %arg25[%c0_158, %c8_159] : memref<8x32xbf16, #tpu.memory_space<vmem>>, vector<8x8xbf16>
    tpu.vector_store %arg25[%c0_158, %c8_159], %282 {strides = array<i32>} : memref<8x32xbf16, #tpu.memory_space<vmem>>, vector<8x8xbf16>,
    %c0_160 = arith.constant 0 : index
    %c16_161 = arith.constant 16 : index
    %284 = vector.load %arg24[%c0_160, %c16_161] : memref<8x96xbf16, #tpu.memory_space<vmem>>, vector<8x8xbf16>
    %285 = vector.shape_cast %284 : vector<8x8xbf16> to vector<1x8x8xbf16>
    %c0_162 = arith.constant 0 : index
    %c48_163 = arith.constant 48 : index
    %286 = vector.load %arg24[%c0_162, %c48_163] : memref<8x96xbf16, #tpu.memory_space<vmem>>, vector<8x8xbf16>
    %287 = vector.shape_cast %286 : vector<8x8xbf16> to vector<1x8x8xbf16>
    %c0_164 = arith.constant 0 : index
    %c80_165 = arith.constant 80 : index
    %288 = vector.load %arg24[%c0_164, %c80_165] : memref<8x96xbf16, #tpu.memory_space<vmem>>, vector<8x8xbf16>
    %289 = vector.shape_cast %288 : vector<8x8xbf16> to vector<1x8x8xbf16>
    "tpu.trace_start"() <{level = 10 : i32, message = "bqd,bkd->bqk"}> : () -> ()
    %cst_166 = arith.constant dense<0.000000e+00> : vector<1x8x8xf32>
    %290 = tpu.matmul %285, %287, %cst_166 {dimension_numbers = #tpu.dot_dimension_numbers<[2], [2], [1], [1], [0, 0, 0, 1, 1, 1], [0], [0]>} : vector<1x8x8xbf16>, vector<1x8x8xbf16>, vector<1x8x8xf32> -> vector<1x8x8xf32>
    "tpu.trace_stop"() : () -> ()
    %cst_167 = arith.constant 0.353553385 : f32
    %291 = vector.broadcast %cst_167 : f32 to vector<1x8x8xf32>
    %292 = arith.mulf %290, %291 : vector<1x8x8xf32>
    %cst_168 = arith.constant dense<0xFF800000> : vector<1x8xf32>
    %293 = vector.multi_reduction <maximumf>, %292, %cst_168 [2] : vector<1x8x8xf32> to vector<1x8xf32>
    %294 = vector.shape_cast %293 : vector<1x8xf32> to vector<1x8x1xf32>
    %295 = vector.broadcast %294 : vector<1x8x1xf32> to vector<1x8x8xf32>
    %296 = arith.subf %292, %295 : vector<1x8x8xf32>
    %297 = math.exp %296 : vector<1x8x8xf32>
    %cst_169 = arith.constant dense<0.000000e+00> : vector<1x8xf32>
    %298 = vector.multi_reduction <add>, %297, %cst_169 [2] : vector<1x8x8xf32> to vector<1x8xf32>
    %299 = vector.shape_cast %298 : vector<1x8xf32> to vector<1x8x1xf32>
    %300 = tpu.reciprocal %299 {approx = true} : vector<1x8x1xf32> -> vector<1x8x1xf32>
    %301 = vector.broadcast %300 : vector<1x8x1xf32> to vector<1x8x8xf32>
    %302 = arith.mulf %297, %301 : vector<1x8x8xf32>
    %303 = arith.truncf %302 : vector<1x8x8xf32> to vector<1x8x8xbf16>
    "tpu.trace_start"() <{level = 10 : i32, message = "bqk,bkd->bqd"}> : () -> ()
    %cst_170 = arith.constant dense<0.000000e+00> : vector<1x8x8xf32>
    %304 = tpu.matmul %303, %289, %cst_170 {dimension_numbers = #tpu.dot_dimension_numbers<[2], [1], [1], [2], [0, 0, 0, 1, 1, 2], [0], [0]>} : vector<1x8x8xbf16>, vector<1x8x8xbf16>, vector<1x8x8xf32> -> vector<1x8x8xf32>
    "tpu.trace_stop"() : () -> ()
    %305 = vector.shape_cast %304 : vector<1x8x8xf32> to vector<8x8xf32>
    %306 = arith.truncf %305 : vector<8x8xf32> to vector<8x8xbf16>
    %c0_171 = arith.constant 0 : index
    %c16_172 = arith.constant 16 : index
    %307 = vector.load %arg25[%c0_171, %c16_172] : memref<8x32xbf16, #tpu.memory_space<vmem>>, vector<8x8xbf16>
    tpu.vector_store %arg25[%c0_171, %c16_172], %306 {strides = array<i32>} : memref<8x32xbf16, #tpu.memory_space<vmem>>, vector<8x8xbf16>,
    %c0_173 = arith.constant 0 : index
    %c24_174 = arith.constant 24 : index
    %308 = vector.load %arg24[%c0_173, %c24_174] : memref<8x96xbf16, #tpu.memory_space<vmem>>, vector<8x8xbf16>
    %309 = vector.shape_cast %308 : vector<8x8xbf16> to vector<1x8x8xbf16>
    %c0_175 = arith.constant 0 : index
    %c56_176 = arith.constant 56 : index
    %310 = vector.load %arg24[%c0_175, %c56_176] : memref<8x96xbf16, #tpu.memory_space<vmem>>, vector<8x8xbf16>
    %311 = vector.shape_cast %310 : vector<8x8xbf16> to vector<1x8x8xbf16>
    %c0_177 = arith.constant 0 : index
    %c88_178 = arith.constant 88 : index
    %312 = vector.load %arg24[%c0_177, %c88_178] : memref<8x96xbf16, #tpu.memory_space<vmem>>, vector<8x8xbf16>
    %313 = vector.shape_cast %312 : vector<8x8xbf16> to vector<1x8x8xbf16>
    "tpu.trace_start"() <{level = 10 : i32, message = "bqd,bkd->bqk"}> : () -> ()
    %cst_179 = arith.constant dense<0.000000e+00> : vector<1x8x8xf32>
    %314 = tpu.matmul %309, %311, %cst_179 {dimension_numbers = #tpu.dot_dimension_numbers<[2], [2], [1], [1], [0, 0, 0, 1, 1, 1], [0], [0]>} : vector<1x8x8xbf16>, vector<1x8x8xbf16>, vector<1x8x8xf32> -> vector<1x8x8xf32>
    "tpu.trace_stop"() : () -> ()
    %cst_180 = arith.constant 0.353553385 : f32
    %315 = vector.broadcast %cst_180 : f32 to vector<1x8x8xf32>
    %316 = arith.mulf %314, %315 : vector<1x8x8xf32>
    %cst_181 = arith.constant dense<0xFF800000> : vector<1x8xf32>
    %317 = vector.multi_reduction <maximumf>, %316, %cst_181 [2] : vector<1x8x8xf32> to vector<1x8xf32>
    %318 = vector.shape_cast %317 : vector<1x8xf32> to vector<1x8x1xf32>
    %319 = vector.broadcast %318 : vector<1x8x1xf32> to vector<1x8x8xf32>
    %320 = arith.subf %316, %319 : vector<1x8x8xf32>
    %321 = math.exp %320 : vector<1x8x8xf32>
    %cst_182 = arith.constant dense<0.000000e+00> : vector<1x8xf32>
    %322 = vector.multi_reduction <add>, %321, %cst_182 [2] : vector<1x8x8xf32> to vector<1x8xf32>
    %323 = vector.shape_cast %322 : vector<1x8xf32> to vector<1x8x1xf32>
    %324 = tpu.reciprocal %323 {approx = true} : vector<1x8x1xf32> -> vector<1x8x1xf32>
    %325 = vector.broadcast %324 : vector<1x8x1xf32> to vector<1x8x8xf32>
    %326 = arith.mulf %321, %325 : vector<1x8x8xf32>
    %327 = arith.truncf %326 : vector<1x8x8xf32> to vector<1x8x8xbf16>
    "tpu.trace_start"() <{level = 10 : i32, message = "bqk,bkd->bqd"}> : () -> ()
    %cst_183 = arith.constant dense<0.000000e+00> : vector<1x8x8xf32>
    %328 = tpu.matmul %327, %313, %cst_183 {dimension_numbers = #tpu.dot_dimension_numbers<[2], [1], [1], [2], [0, 0, 0, 1, 1, 2], [0], [0]>} : vector<1x8x8xbf16>, vector<1x8x8xbf16>, vector<1x8x8xf32> -> vector<1x8x8xf32>
    "tpu.trace_stop"() : () -> ()
    %329 = vector.shape_cast %328 : vector<1x8x8xf32> to vector<8x8xf32>
    %330 = arith.truncf %329 : vector<8x8xf32> to vector<8x8xbf16>
    %c0_184 = arith.constant 0 : index
    %c24_185 = arith.constant 24 : index
    %331 = vector.load %arg25[%c0_184, %c24_185] : memref<8x32xbf16, #tpu.memory_space<vmem>>, vector<8x8xbf16>
    tpu.vector_store %arg25[%c0_184, %c24_185], %330 {strides = array<i32>} : memref<8x32xbf16, #tpu.memory_space<vmem>>, vector<8x8xbf16>,
    %c0_186 = arith.constant 0 : index
    %c0_187 = arith.constant 0 : index
    %332 = vector.load %arg25[%c0_186, %c0_187] : memref<8x32xbf16, #tpu.memory_space<vmem>>, vector<8x32xbf16>
    %c1_188 = arith.constant 1 : index
    %c0_189 = arith.constant 0 : index
    %c0_190 = arith.constant 0 : index
    %333 = vector.load %arg10[%c1_188, %c0_189, %c0_190] : memref<2x32x32xbf16, #tpu.memory_space<vmem>>, vector<1x32x32xbf16>
    %334 = vector.shape_cast %333 : vector<1x32x32xbf16> to vector<32x32xbf16>
    %cst_191 = arith.constant dense<0.000000e+00> : vector<8x32xf32>
    %335 = tpu.matmul %332, %334, %cst_191 {dimension_numbers = #tpu.dot_dimension_numbers<[1], [0], [0], [1], [0, 0, 1, 1], [], []>} : vector<8x32xbf16>, vector<32x32xbf16>, vector<8x32xf32> -> vector<8x32xf32>
    %336 = arith.addf %201, %335 : vector<8x32xf32>
    %c1_192 = arith.constant 1 : index
    %c0_193 = arith.constant 0 : index
    %c0_194 = arith.constant 0 : index
    %337 = vector.load %arg11[%c1_192, %c0_193, %c0_194] : memref<2x1x32xf32, #tpu.memory_space<vmem>>, vector<1x1x32xf32>
    %338 = vector.shape_cast %337 : vector<1x1x32xf32> to vector<1x32xf32>
    %339 = vector.broadcast %338 : vector<1x32xf32> to vector<8x32xf32>
    %340 = arith.addf %336, %339 : vector<8x32xf32>
    %c1_195 = arith.constant 1 : index
    %c0_196 = arith.constant 0 : index
    %c0_197 = arith.constant 0 : index
    %341 = vector.load %arg12[%c1_195, %c0_196, %c0_197] : memref<2x1x32xf32, #tpu.memory_space<vmem>>, vector<1x1x32xf32>
    %342 = vector.shape_cast %341 : vector<1x1x32xf32> to vector<1x32xf32>
    %c1_198 = arith.constant 1 : index
    %c0_199 = arith.constant 0 : index
    %c0_200 = arith.constant 0 : index
    %343 = vector.load %arg13[%c1_198, %c0_199, %c0_200] : memref<2x1x32xf32, #tpu.memory_space<vmem>>, vector<1x1x32xf32>
    %344 = vector.shape_cast %343 : vector<1x1x32xf32> to vector<1x32xf32>
    %cst_201 = arith.constant dense<0.000000e+00> : vector<8xf32>
    %345 = vector.multi_reduction <add>, %340, %cst_201 [1] : vector<8x32xf32> to vector<8xf32>
    %346 = vector.shape_cast %345 : vector<8xf32> to vector<8x1xf32>
    %cst_202 = arith.constant 3.200000e+01 : f32
    %347 = vector.broadcast %cst_202 : f32 to vector<8x1xf32>
    %348 = arith.divf %346, %347 : vector<8x1xf32>
    %349 = vector.broadcast %348 : vector<8x1xf32> to vector<8x32xf32>
    %350 = arith.subf %340, %349 : vector<8x32xf32>
    %351 = arith.mulf %350, %350 : vector<8x32xf32>
    %cst_203 = arith.constant dense<0.000000e+00> : vector<8xf32>
    %352 = vector.multi_reduction <add>, %351, %cst_203 [1] : vector<8x32xf32> to vector<8xf32>
    %353 = vector.shape_cast %352 : vector<8xf32> to vector<8x1xf32>
    %cst_204 = arith.constant 3.200000e+01 : f32
    %354 = vector.broadcast %cst_204 : f32 to vector<8x1xf32>
    %355 = arith.divf %353, %354 : vector<8x1xf32>
    %cst_205 = arith.constant 9.99999974E-6 : f32
    %356 = vector.broadcast %cst_205 : f32 to vector<8x1xf32>
    %357 = arith.addf %355, %356 : vector<8x1xf32>
    %358 = math.rsqrt %357 : vector<8x1xf32>
    %359 = vector.broadcast %358 : vector<8x1xf32> to vector<8x32xf32>
    %360 = arith.mulf %350, %359 : vector<8x32xf32>
    %361 = vector.broadcast %342 : vector<1x32xf32> to vector<8x32xf32>
    %362 = arith.mulf %360, %361 : vector<8x32xf32>
    %363 = vector.broadcast %344 : vector<1x32xf32> to vector<8x32xf32>
    %364 = arith.addf %362, %363 : vector<8x32xf32>
    %365 = arith.truncf %364 : vector<8x32xf32> to vector<8x32xbf16>
    %c1_206 = arith.constant 1 : index
    %c0_207 = arith.constant 0 : index
    %c0_208 = arith.constant 0 : index
    %366 = vector.load %arg14[%c1_206, %c0_207, %c0_208] : memref<2x32x64xbf16, #tpu.memory_space<vmem>>, vector<1x32x64xbf16>
    %367 = vector.shape_cast %366 : vector<1x32x64xbf16> to vector<32x64xbf16>
    %cst_209 = arith.constant dense<0.000000e+00> : vector<8x64xf32>
    %368 = tpu.matmul %365, %367, %cst_209 {dimension_numbers = #tpu.dot_dimension_numbers<[1], [0], [0], [1], [0, 0, 1, 1], [], []>} : vector<8x32xbf16>, vector<32x64xbf16>, vector<8x64xf32> -> vector<8x64xf32>
    %c1_210 = arith.constant 1 : index
    %c0_211 = arith.constant 0 : index
    %c0_212 = arith.constant 0 : index
    %369 = vector.load %arg15[%c1_210, %c0_211, %c0_212] : memref<2x1x64xf32, #tpu.memory_space<vmem>>, vector<1x1x64xf32>
    %370 = vector.shape_cast %369 : vector<1x1x64xf32> to vector<1x64xf32>
    %371 = vector.broadcast %370 : vector<1x64xf32> to vector<8x64xf32>
    %372 = arith.addf %368, %371 : vector<8x64xf32>
    %373 = arith.negf %372 : vector<8x64xf32>
    %374 = math.exp %373 : vector<8x64xf32>
    %cst_213 = arith.constant 1.000000e+00 : f32
    %375 = vector.broadcast %cst_213 : f32 to vector<8x64xf32>
    %376 = arith.addf %375, %374 : vector<8x64xf32>
    %377 = arith.divf %375, %376 : vector<8x64xf32>
    %378 = arith.mulf %372, %377 : vector<8x64xf32>
    %379 = arith.truncf %378 : vector<8x64xf32> to vector<8x64xbf16>
    %c1_214 = arith.constant 1 : index
    %c0_215 = arith.constant 0 : index
    %c0_216 = arith.constant 0 : index
    %380 = vector.load %arg16[%c1_214, %c0_215, %c0_216] : memref<2x64x32xbf16, #tpu.memory_space<vmem>>, vector<1x64x32xbf16>
    %381 = vector.shape_cast %380 : vector<1x64x32xbf16> to vector<64x32xbf16>
    %cst_217 = arith.constant dense<0.000000e+00> : vector<8x32xf32>
    %382 = tpu.matmul %379, %381, %cst_217 {dimension_numbers = #tpu.dot_dimension_numbers<[1], [0], [0], [1], [0, 0, 1, 1], [], []>} : vector<8x64xbf16>, vector<64x32xbf16>, vector<8x32xf32> -> vector<8x32xf32>
    %383 = arith.addf %340, %382 : vector<8x32xf32>
    %c1_218 = arith.constant 1 : index
    %c0_219 = arith.constant 0 : index
    %c0_220 = arith.constant 0 : index
    %384 = vector.load %arg17[%c1_218, %c0_219, %c0_220] : memref<2x1x32xf32, #tpu.memory_space<vmem>>, vector<1x1x32xf32>
    %385 = vector.shape_cast %384 : vector<1x1x32xf32> to vector<1x32xf32>
    %386 = vector.broadcast %385 : vector<1x32xf32> to vector<8x32xf32>
    %387 = arith.addf %383, %386 : vector<8x32xf32>
    %c0_221 = arith.constant 0 : index
    %c0_222 = arith.constant 0 : index
    %388 = vector.load %arg23[%c0_221, %c0_222] : memref<8x32xf32, #tpu.memory_space<vmem>>, vector<8x32xf32>
    tpu.vector_store %arg23[%c0_221, %c0_222], %387 {strides = array<i32>} : memref<8x32xf32, #tpu.memory_space<vmem>>, vector<8x32xf32>,
    %c0_223 = arith.constant 0 : index
    %c0_224 = arith.constant 0 : index
    %389 = vector.load %arg23[%c0_223, %c0_224] : memref<8x32xf32, #tpu.memory_space<vmem>>, vector<4x32xf32>
    %c0_225 = arith.constant 0 : index
    %c0_226 = arith.constant 0 : index
    %390 = vector.load %arg18[%c0_225, %c0_226] : memref<1x32xf32, #tpu.memory_space<vmem>>, vector<1x32xf32>
    %c0_227 = arith.constant 0 : index
    %c0_228 = arith.constant 0 : index
    %391 = vector.load %arg19[%c0_227, %c0_228] : memref<1x32xf32, #tpu.memory_space<vmem>>, vector<1x32xf32>
    %cst_229 = arith.constant dense<0.000000e+00> : vector<4xf32>
    %392 = vector.multi_reduction <add>, %389, %cst_229 [1] : vector<4x32xf32> to vector<4xf32>
    %393 = vector.shape_cast %392 : vector<4xf32> to vector<4x1xf32>
    %cst_230 = arith.constant 3.200000e+01 : f32
    %394 = vector.broadcast %cst_230 : f32 to vector<4x1xf32>
    %395 = arith.divf %393, %394 : vector<4x1xf32>
    %396 = vector.broadcast %395 : vector<4x1xf32> to vector<4x32xf32>
    %397 = arith.subf %389, %396 : vector<4x32xf32>
    %398 = arith.mulf %397, %397 : vector<4x32xf32>
    %cst_231 = arith.constant dense<0.000000e+00> : vector<4xf32>
    %399 = vector.multi_reduction <add>, %398, %cst_231 [1] : vector<4x32xf32> to vector<4xf32>
    %400 = vector.shape_cast %399 : vector<4xf32> to vector<4x1xf32>
    %cst_232 = arith.constant 3.200000e+01 : f32
    %401 = vector.broadcast %cst_232 : f32 to vector<4x1xf32>
    %402 = arith.divf %400, %401 : vector<4x1xf32>
    %cst_233 = arith.constant 9.99999974E-6 : f32
    %403 = vector.broadcast %cst_233 : f32 to vector<4x1xf32>
    %404 = arith.addf %402, %403 : vector<4x1xf32>
    %405 = math.rsqrt %404 : vector<4x1xf32>
    %406 = vector.broadcast %405 : vector<4x1xf32> to vector<4x32xf32>
    %407 = arith.mulf %397, %406 : vector<4x32xf32>
    %408 = vector.broadcast %390 : vector<1x32xf32> to vector<4x32xf32>
    %409 = arith.mulf %407, %408 : vector<4x32xf32>
    %410 = vector.broadcast %391 : vector<1x32xf32> to vector<4x32xf32>
    %411 = arith.addf %409, %410 : vector<4x32xf32>
    %412 = arith.truncf %411 : vector<4x32xf32> to vector<4x32xbf16>
    %c0_234 = arith.constant 0 : index
    %c0_235 = arith.constant 0 : index
    %413 = vector.load %arg20[%c0_234, %c0_235] : memref<32x128xbf16, #tpu.memory_space<vmem>>, vector<32x128xbf16>
    %cst_236 = arith.constant dense<0.000000e+00> : vector<4x128xf32>
    %414 = tpu.matmul %412, %413, %cst_236 {dimension_numbers = #tpu.dot_dimension_numbers<[1], [0], [0], [1], [0, 0, 1, 1], [], []>} : vector<4x32xbf16>, vector<32x128xbf16>, vector<4x128xf32> -> vector<4x128xf32>
    %c0_237 = arith.constant 0 : index
    %c0_238 = arith.constant 0 : index
    %415 = vector.load %arg21[%c0_237, %c0_238] : memref<1x128xf32, #tpu.memory_space<vmem>>, vector<1x128xf32>
    %416 = vector.broadcast %415 : vector<1x128xf32> to vector<4x128xf32>
    %417 = arith.addf %414, %416 : vector<4x128xf32>
    %c0_239 = arith.constant 0 : index
    %c0_240 = arith.constant 0 : index
    %c0_241 = arith.constant 0 : index
    %418 = vector.load %arg22[%c0_239, %c0_240, %c0_241] : memref<1x4x128xf32, #tpu.memory_space<vmem>>, vector<1x4x128xf32>
    %419 = vector.shape_cast %418 : vector<1x4x128xf32> to vector<4x128xf32>
    %420 = vector.shape_cast %417 : vector<4x128xf32> to vector<1x4x128xf32>
    tpu.vector_store %arg22[%c0_239, %c0_240, %c0_241], %420 {strides = array<i32>} : memref<1x4x128xf32, #tpu.memory_space<vmem>>, vector<1x4x128xf32>,
    return
  }
  func.func @transform_0(%arg0: i32) -> (i32, i32, i32) {
    %c0_i32 = arith.constant 0 : i32
    %c0_i32_0 = arith.constant 0 : i32
    %c0_i32_1 = arith.constant 0 : i32
    return %arg0, %c0_i32, %c0_i32_0 : i32, i32, i32
  }
  func.func @transform_1(%arg0: i32) -> (i32, i32) {
    %c0_i32 = arith.constant 0 : i32
    %c0_i32_0 = arith.constant 0 : i32
    %c0_i32_1 = arith.constant 0 : i32
    return %c0_i32, %c0_i32_0 : i32, i32
  }
  func.func @transform_2(%arg0: i32) -> (i32, i32) {
    %c0_i32 = arith.constant 0 : i32
    %c0_i32_0 = arith.constant 0 : i32
    %c0_i32_1 = arith.constant 0 : i32
    return %c0_i32, %c0_i32_0 : i32, i32
  }
  func.func @transform_3(%arg0: i32) -> (i32, i32) {
    %c0_i32 = arith.constant 0 : i32
    %c0_i32_0 = arith.constant 0 : i32
    %c0_i32_1 = arith.constant 0 : i32
    return %c0_i32, %c0_i32_0 : i32, i32
  }
  func.func @transform_4(%arg0: i32) -> (i32, i32) {
    %c0_i32 = arith.constant 0 : i32
    %c0_i32_0 = arith.constant 0 : i32
    %c0_i32_1 = arith.constant 0 : i32
    return %c0_i32, %c0_i32_0 : i32, i32
  }
  func.func @transform_5(%arg0: i32) -> (i32, i32, i32) {
    %c0_i32 = arith.constant 0 : i32
    %c0_i32_0 = arith.constant 0 : i32
    %c0_i32_1 = arith.constant 0 : i32
    %c0_i32_2 = arith.constant 0 : i32
    return %c0_i32, %c0_i32_0, %c0_i32_1 : i32, i32, i32
  }
  func.func @transform_6(%arg0: i32) -> (i32, i32, i32) {
    %c0_i32 = arith.constant 0 : i32
    %c0_i32_0 = arith.constant 0 : i32
    %c0_i32_1 = arith.constant 0 : i32
    %c0_i32_2 = arith.constant 0 : i32
    return %c0_i32, %c0_i32_0, %c0_i32_1 : i32, i32, i32
  }
  func.func @transform_7(%arg0: i32) -> (i32, i32, i32) {
    %c0_i32 = arith.constant 0 : i32
    %c0_i32_0 = arith.constant 0 : i32
    %c0_i32_1 = arith.constant 0 : i32
    %c0_i32_2 = arith.constant 0 : i32
    return %c0_i32, %c0_i32_0, %c0_i32_1 : i32, i32, i32
  }
  func.func @transform_8(%arg0: i32) -> (i32, i32, i32) {
    %c0_i32 = arith.constant 0 : i32
    %c0_i32_0 = arith.constant 0 : i32
    %c0_i32_1 = arith.constant 0 : i32
    %c0_i32_2 = arith.constant 0 : i32
    return %c0_i32, %c0_i32_0, %c0_i32_1 : i32, i32, i32
  }
  func.func @transform_9(%arg0: i32) -> (i32, i32, i32) {
    %c0_i32 = arith.constant 0 : i32
    %c0_i32_0 = arith.constant 0 : i32
    %c0_i32_1 = arith.constant 0 : i32
    %c0_i32_2 = arith.constant 0 : i32
    return %c0_i32, %c0_i32_0, %c0_i32_1 : i32, i32, i32
  }
  func.func @transform_10(%arg0: i32) -> (i32, i32, i32) {
    %c0_i32 = arith.constant 0 : i32
    %c0_i32_0 = arith.constant 0 : i32
    %c0_i32_1 = arith.constant 0 : i32
    %c0_i32_2 = arith.constant 0 : i32
    return %c0_i32, %c0_i32_0, %c0_i32_1 : i32, i32, i32
  }
  func.func @transform_11(%arg0: i32) -> (i32, i32, i32) {
    %c0_i32 = arith.constant 0 : i32
    %c0_i32_0 = arith.constant 0 : i32
    %c0_i32_1 = arith.constant 0 : i32
    %c0_i32_2 = arith.constant 0 : i32
    return %c0_i32, %c0_i32_0, %c0_i32_1 : i32, i32, i32
  }
  func.func @transform_12(%arg0: i32) -> (i32, i32, i32) {
    %c0_i32 = arith.constant 0 : i32
    %c0_i32_0 = arith.constant 0 : i32
    %c0_i32_1 = arith.constant 0 : i32
    %c0_i32_2 = arith.constant 0 : i32
    return %c0_i32, %c0_i32_0, %c0_i32_1 : i32, i32, i32
  }
  func.func @transform_13(%arg0: i32) -> (i32, i32, i32) {
    %c0_i32 = arith.constant 0 : i32
    %c0_i32_0 = arith.constant 0 : i32
    %c0_i32_1 = arith.constant 0 : i32
    %c0_i32_2 = arith.constant 0 : i32
    return %c0_i32, %c0_i32_0, %c0_i32_1 : i32, i32, i32
  }
  func.func @transform_14(%arg0: i32) -> (i32, i32, i32) {
    %c0_i32 = arith.constant 0 : i32
    %c0_i32_0 = arith.constant 0 : i32
    %c0_i32_1 = arith.constant 0 : i32
    %c0_i32_2 = arith.constant 0 : i32
    return %c0_i32, %c0_i32_0, %c0_i32_1 : i32, i32, i32
  }
  func.func @transform_15(%arg0: i32) -> (i32, i32, i32) {
    %c0_i32 = arith.constant 0 : i32
    %c0_i32_0 = arith.constant 0 : i32
    %c0_i32_1 = arith.constant 0 : i32
    %c0_i32_2 = arith.constant 0 : i32
    return %c0_i32, %c0_i32_0, %c0_i32_1 : i32, i32, i32
  }
  func.func @transform_16(%arg0: i32) -> (i32, i32, i32) {
    %c0_i32 = arith.constant 0 : i32
    %c0_i32_0 = arith.constant 0 : i32
    %c0_i32_1 = arith.constant 0 : i32
    %c0_i32_2 = arith.constant 0 : i32
    return %c0_i32, %c0_i32_0, %c0_i32_1 : i32, i32, i32
  }
  func.func @transform_17(%arg0: i32) -> (i32, i32) {
    %c0_i32 = arith.constant 0 : i32
    %c0_i32_0 = arith.constant 0 : i32
    %c0_i32_1 = arith.constant 0 : i32
    return %c0_i32, %c0_i32_0 : i32, i32
  }
  func.func @transform_18(%arg0: i32) -> (i32, i32) {
    %c0_i32 = arith.constant 0 : i32
    %c0_i32_0 = arith.constant 0 : i32
    %c0_i32_1 = arith.constant 0 : i32
    return %c0_i32, %c0_i32_0 : i32, i32
  }
  func.func @transform_19(%arg0: i32) -> (i32, i32) {
    %c0_i32 = arith.constant 0 : i32
    %c0_i32_0 = arith.constant 0 : i32
    %c0_i32_1 = arith.constant 0 : i32
    return %c0_i32, %c0_i32_0 : i32, i32
  }
  func.func @transform_20(%arg0: i32) -> (i32, i32) {
    %c0_i32 = arith.constant 0 : i32
    %c0_i32_0 = arith.constant 0 : i32
    %c0_i32_1 = arith.constant 0 : i32
    return %c0_i32, %c0_i32_0 : i32, i32
  }
  func.func @transform_21(%arg0: i32) -> (i32, i32, i32) {
    %c0_i32 = arith.constant 0 : i32
    %c0_i32_0 = arith.constant 0 : i32
    %c0_i32_1 = arith.constant 0 : i32
    return %arg0, %c0_i32, %c0_i32_0 : i32, i32, i32
  }
}

</mosaic_0001>

<bundles_post_ra>
// kernel: run.1
= control target key start
LH: loop header
LB: loop body
LE: loop exit
PB: predicated region body
PF: predicated region fallthrough
CT: control target
= control target key end

     0   :  { %s3988_s0 = inlined_call_operand.vmem [shape: f32[2,4,256], index: 0, kind: input, shape index: {}]   ;;  %s3989_s1 = inlined_call_operand.vmem [shape: bf16[256,32], index: 1, kind: input, shape index: {}]   ;;  %s3990_s2 = inlined_call_operand.vmem [shape: f32[1,32], index: 2, kind: input, shape index: {}]   ;;  %s3991_s3 = inlined_call_operand.vmem [shape: f32[4,32], index: 3, kind: input, shape index: {}]   ;;  %s3992_s4 = inlined_call_operand.vmem [shape: f32[4,32], index: 4, kind: input, shape index: {}]   ;;  %s3993_s5 = inlined_call_operand.vmem [shape: f32[2,1,32], index: 5, kind: input, shape index: {}]   ;;  %s3994_s6 = inlined_call_operand.vmem [shape: f32[2,1,32], index: 6, kind: input, shape index: {}]   ;;  %s3995_s7 = inlined_call_operand.vmem [shape: bf16[2,32,96], index: 7, kind: input, shape index: {}]   ;;  %s3996_s8 = inlined_call_operand.vmem [shape: f32[2,1,96], index: 8, kind: input, shape index: {}]   ;;  %s3997_s9 = inlined_call_operand.vmem [shape: bf16[2,32,32], index: 9, kind: input, shape index: {}]   ;;  %s3998_s10 = inlined_call_operand.vmem [shape: f32[2,1,32], index: 10, kind: input, shape index: {}]   ;;  %s3999_s11 = inlined_call_operand.vmem [shape: f32[2,1,32], index: 11, kind: input, shape index: {}]   ;;  %s4000_s12 = inlined_call_operand.vmem [shape: f32[2,1,32], index: 12, kind: input, shape index: {}]   ;;  %s4001_s13 = inlined_call_operand.vmem [shape: bf16[2,32,64], index: 13, kind: input, shape index: {}]   ;;  %s4002_s14 = inlined_call_operand.vmem [shape: f32[2,1,64], index: 14, kind: input, shape index: {}]   ;;  %s4003_s15 = inlined_call_operand.vmem [shape: bf16[2,64,32], index: 15, kind: input, shape index: {}]   ;;  %s4004_s16 = inlined_call_operand.vmem [shape: f32[2,1,32], index: 16, kind: input, shape index: {}]   ;;  %s4005_s17 = inlined_call_operand.vmem [shape: f32[1,32], index: 17, kind: input, shape index: {}]   ;;  %s4006_s18 = inlined_call_operand.vmem [shape: f32[1,32], index: 18, kind: input, shape index: {}]   ;;  %s4007_s19 = inlined_call_operand.vmem [shape: bf16[32,128], index: 19, kind: input, shape index: {}]   ;;  %s4008_s20 = inlined_call_operand.vmem [shape: f32[1,128], index: 20, kind: input, shape index: {}]   ;;  %s4009_s21 = inlined_call_operand.hbm [shape: f32[2,4,128], index: 21, kind: output, shape index: {}]  }
   0x1   :  { %4029 = sst [smem:[#allocation15_spill]] %s3988_s0 }
   0x2   :  { %4030 = sst [smem:[#allocation16_spill]] %s3989_s1 }
   0x3   :  { %4031 = sst [smem:[#allocation17_spill]] %s3990_s2 }
   0x4   :  { %4032 = sst [smem:[#allocation18_spill]] %s3991_s3 }
   0x5   :  { %4033 = sst [smem:[#allocation19_spill]] %s3992_s4 }
   0x6   :  { %4034 = sst [smem:[#allocation20_spill]] %s3993_s5 }
   0x7   :  { %4035 = sst [smem:[#allocation21_spill]] %s4008_s20 }
   0x8   :  { %4036 = sst [smem:[#allocation22_spill]] %s4009_s21 }
   0x9   :  { %26 = vsyncpa [#allocation6], 0 }
   0xa   :  { %28 = vsyncpa [#allocation6 + $0x1], 0  ;;  %s3467_s2 = smov 0   ;;  %s3469_s25 = smov 0  }
   0xb   :  { %s3471_s26 = smov 0   ;;  %s3473_s27 = smov 0  }
   0xc LB: > { %4037 = sst [smem:[#allocation8_spill]] %s3326_s2  ;;  %s3488_s3 = sadd.s32 4294967295, %s3338_s27   ;;  %s3338_s27 = sphi %s3473_s27, %s4066_s27   ;;  %s3334_s26 = sphi %s3471_s26, %s4068_s26   ;;  %s3330_s25 = sphi %s3469_s25, %s4070_s25   ;;  %s3326_s2 = sphi %s3467_s2, %s4069_s2  }
   0xd   : > { %4038 = sst [smem:[#allocation9_spill]] %s3334_s26  ;;  %s2718_s28 = sadd.s32 4294967294, %s3338_s27  }
   0xe   : > { %4039 = sst [smem:[#allocation10_spill]] %s3338_s27  ;;  %s3492_s29 = sadd.s32 1, %s3338_s27  }
   0xf   : > { %4040 = sst [smem:[#allocation11_spill]] %s3492_s29  ;;  %s487_s0 = sadd.s32 1, %s3334_s26 }
  0x10   : > { %s484_s4 = ssub.s32 %s3338_s27, %s3492_s29  ;;  %p497_p0 = scmp.ne.s32.totalorder %s3334_s26, %s3330_s25 }
  0x11   : > { %p485_p1 = scmp.eq.s32.totalorder %s484_s4, 0  ;;  %p498_p2 = scmp.eq.s32.totalorder %s3488_s3, 1 }
  0x12   : > { %p503_p3 = scmp.ne.s32.totalorder %s3330_s25, %s3326_s2  ;;  %p504_p4 = scmp.eq.s32.totalorder %s2718_s28, 1 }
  0x13   : > { %s3503_s30 = scalar_select %p485_p1, %s3334_s26, %s487_s0  }
  0x14   : > { %p3505_p5 = por %p498_p2, %p497_p0  ;;  %p3509_p6 = por %p504_p4, %p503_p3 }
  0x15   : > { %4041 = sst [smem:[#allocation12_spill]] %s3503_s30  ;;  %p2721_p7 = scmp.ge.s32.totalorder %s3338_s27, 1 }
  0x16   : > { %s4042_s5 = scalar_select %p3505_p5, 1, 0 }
  0x17   : > { %s4044_s22 = scalar_select %p3509_p6, 1, 0 }
  0x18   : > { %4043 = sst [smem:[#allocation13_spill]] %s4042_s5  ;;  %p590_p8 = scmp.lt.s32.totalorder %s3338_s27, 3 }
  0x19   : > { %4045 = sst [smem:[#allocation14_spill]] %s4044_s22 }
  0x1a   : > { %p591_p9 = pnand %p2721_p7, %p590_p8 }
  0x1b   : > { %s4046_s24 = sld [smem:[#allocation16_spill]] (!%p591_p9)  ;;  %p650_p10 = scmp.lt.s32.totalorder (!%p591_p9), %s3488_s3, 1  ;;  %vm840_vm0 = vcmask (!%p591_p9), 257024   ;;  %vm846_vm1 = vcmask (!%p591_p9), 261120   ;;  %v3196_v37 = vld [vmem:[%s3995_s7] sm:$0xff] (!%p591_p9)   ;;  %v3340_v38 = vmov (!%p591_p9), 0.0  }
  0x1c   : > { %594 = sbr.rel (%p591_p9) target bundleno = 6511 (0x196f), region = 104  ;;  %s4047_s28 = sld [smem:[#allocation15_spill]] (!%p591_p9)  ;;  %2948 = vmatprep.subr.bf16.mxu1 (!%p591_p9), %v3340_v38  ;;  %vm3341_vm2 = vmmov (!%p591_p9), 0   ;;  %v3197_v39 = vld [vmem:[%s3995_s7 + $0x8] sm:$0xff] (!%p591_p9)   ;;  %v2743_v46 = vld [vmem:[%s3994_s6] ss:$0 sm:$0xff] (!%p591_p9) }
  0x1d   : > { %s4049_s26 = sld [smem:[#allocation19_spill]] (!%p591_p9)  ;;  %s4050_s20 = sld [smem:[#allocation17_spill]] (!%p591_p9)  ;;  %2952 = vmatprep.mubr.msk.bf16.mxu1 (!%p591_p9), %vm3341_vm2, %v3340_v38  ;;  %2949 = vmatpush3.bf16.msra.mxu1 (!%p591_p9), %v3196_v37  ;;  %v2744_v50 = vld [vmem:[%s3996_s8] ss:$0 sm:$0xff] (!%p591_p9)  ;;  %vm943_vm3 = vcmask (!%p591_p9), 781312   ;;  %vm951_vm4 = vcmask (!%p591_p9), 64512  }
  0x1e   : > { %2950 = vmatprep.subr.bf16.mxu1 (!%p591_p9), %v3340_v38  ;;  %s4024_s29 = smov (!%p591_p9), 64   ;;  %s3343_s23 = smov (!%p591_p9), 96   ;;  %vm1016_vm5 = vcmask (!%p591_p9), 1043456   ;;  %vm1061_vm6 = vcmask (!%p591_p9), 60416   ;;  %vm1185_vm7 = vcmask (!%p591_p9), 126016   ;;  %vm1309_vm8 = vcmask (!%p591_p9), 191616  }
  0x1f   : > { %s3345_s21 = smov (!%p591_p9), 88   ;;  %s3347_s27 = smov (!%p591_p9), 112   ;;  %vm1433_vm9 = vcmask (!%p591_p9), 257216   ;;  %vm1640_vm10 = vcmask (!%p591_p9), 523264  }
  0x20   : > { %s4028_s5 = smov (!%p591_p9), 72   ;;  %s3349_s1 = smov (!%p591_p9), 104  }
  0x21   : > { %v3179_v0 = vld [vmem:[%s4046_s24 + $0x40] sm:$0xff] (!%p591_p9)   ;;  %v3181_v2 = vld [vmem:[%s4046_s24 + $0x48] sm:$0xff] (!%p591_p9)   ;;  %v3183_v4 = vld [vmem:[%s4046_s24 + $0x50] sm:$0xff] (!%p591_p9)   ;;  %2951 = vmatpush3.bf16.msra.mxu1 (!%p591_p9), %v3197_v39  ;;  %s4021_s30 = smov (!%p591_p9), 40   ;;  %s4027_s4 = smov (!%p591_p9), 8  }
  0x22   : > { %v3180_v1 = vld [vmem:[%s4046_s24] sm:$0xff] (!%p591_p9)   ;;  %2863 = vmatprep.subr.bf16.mxu0 (!%p591_p9), %v3179_v0  ;;  %v3182_v3 = vld [vmem:[%s4046_s24 + $0x8] sm:$0xff] (!%p591_p9)   ;;  %v3184_v5 = vld [vmem:[%s4046_s24 + $0x10] sm:$0xff] (!%p591_p9)   ;;  %2956 = vmatprep.subr.bf16.mxu1 (!%p591_p9), %v3340_v38 }
  0x23   : > { %2864 = vmatpush3.bf16.msra.mxu0 %v3180_v1  ;;  %s651_s22 = scalar_select %p650_p10, %s3488_s3, 1  ;;  %v3185_v6 = vld [vmem:[%s4046_s24 + $0x58] sm:$0xff]   ;;  %v3187_v8 = vld [vmem:[%s4046_s24 + $0x60] sm:$0xff]   ;;  %v3189_v10 = vld [vmem:[%s4046_s24 + $0x68] sm:$0xff]  }
  0x24   : > { %2865 = vmatprep.subr.bf16.mxu0 %v3181_v2  ;;  %v3186_v7 = vld [vmem:[%s4046_s24 + $0x18] sm:$0xff]   ;;  %v3188_v9 = vld [vmem:[%s4046_s24 + $0x20] sm:$0xff]   ;;  %v3190_v12 = vld [vmem:[%s4046_s24 + $0x28] sm:$0xff]  }
  0x25   : > { %s2856_s2 = sshll.u32 %s651_s22, 3  ;;  %v3191_v14 = vld [vmem:[%s4046_s24 + $0x70] sm:$0xff]   ;;  %v3193_v17 = vld [vmem:[%s4046_s24 + $0x78] sm:$0xff]   ;;  %s4048_s22 = sld [smem:[#allocation18_spill]]  ;;  %v838_v21 = vld [vmem:[%s4049_s26] sm:$0xf] }
  0x26   : > { %s654_s0 = scalar_lea.vmem %s4047_s28, %s2856_s2  ;;  %v3192_v16 = vld [vmem:[%s4046_s24 + $0x30] sm:$0xff]   ;;  %v3194_v18 = vld [vmem:[%s4046_s24 + $0x38] sm:$0xff]   ;;  %v2725_v24 = vld [vmem:[%s4050_s20] ss:$0 sm:$0xff]  ;;  %s3344_s20 = smov 80  }
  0x27   : > { %2866 = vmatpush3.bf16.msra.mxu0 %v3182_v3  ;;  %v656_v11 = vld [vmem:[%s654_s0] sm:$0xff]  ;;  %s4051_s0 = sld [smem:[#allocation20_spill]]  ;;  %s3346_s2 = smov 120  }
  0x28   : > { %2867 = vmatprep.subr.bf16.mxu0 %v3183_v4  ;;  %v658_v13 = vcombine.high %v656_v11, %v656_v11  ;;  %v660_v19 = vpack.c.bf16 %v656_v11, %v656_v11  ;;  %s4022_s28 = smov 48   ;;  %s4059_s26 = smov 24  }
  0x2a   : > { %v661_v15 = vpack.c.bf16 %v658_v13, %v658_v13 }
  0x2b   : > { %2868 = vmatpush3.bf16.msra.mxu0 %v3184_v5  ;;  %v837_v20 = vld [vmem:[%s4048_s22] sm:$0xf]  ;;  %s4023_s22 = smov 56  }
  0x2c   : > { %2869 = vmatprep.subr.bf16.mxu0 %v3185_v6  ;;  %829 = vmatprep.mubr.bf16.mxu0 %v661_v15  ;;  %v839_v22 = vadd.f32 %v838_v21, %v837_v20 }
  0x2d   : > { %v2742_v44 = vld [vmem:[%s4051_s0] ss:$0 sm:$0xff] }
  0x2e   : > { %841 = vst.msk [vmem:[#allocation2] sm:$0xf] %vm840_vm0, %v839_v22 }
  0x2f   : > { %2870 = vmatpush3.bf16.msra.mxu0 %v3186_v7 }
  0x30   : > { %2871 = vmatprep.subr.bf16.mxu0 %v3187_v8 }
  0x33   : > { %2872 = vmatpush3.bf16.msra.mxu0 %v3188_v9 }
  0x34   : > { %2873 = vmatprep.subr.bf16.mxu0 %v3189_v10 }
  0x37   : > { %2874 = vmatpush3.bf16.msra.mxu0 %v3190_v12 }
  0x38   : > { %2875 = vmatprep.subr.bf16.mxu0 %v3191_v14 }
  0x3b   : > { %2876 = vmatpush3.bf16.msra.mxu0 %v3192_v16 }
  0x3c   : > { %2877 = vmatprep.subr.bf16.mxu0 %v3193_v17 }
  0x3f   : > { %2878 = vmatpush3.bf16.msra.mxu0 %v3194_v18 }
  0x40   : > { %2974 = vmatprep.subr.bf16.mxu0 %v3340_v38 }
  0x42   : > { %830 = vmatmul.mubr.bf16.vlgmr.msra.gmra.mrb[0].mxu0 %v660_v19 }
  0x43   : > { %2976 = vmatprep.mubr.msk.bf16.mxu0 %vm3341_vm2, %v3340_v38 }
 0x115   : > { %v2879_v23 = vpop.f32.mrb[0].mxu0 }
 0x116   : > { %v2880_v25 = vpop.f32.mrb[1].mxu0 }
 0x117   : > { %v2881_v26 = vadd.f32 %v2880_v25, %v2879_v23  ;;  %v2882_v27 = vpop.f32.mrb[2].mxu0 }
 0x118   : > { %v2883_v28 = vpop.f32.mrb[3].mxu0 }
 0x119   : > { %v832_v29 = vadd.f32 %v2881_v26, %v2725_v24 }
 0x11b   : > { %842 = vst.msk [vmem:[#allocation2 + $0x4] sm:$0xf] %vm840_vm0, %v832_v29 }
 0x122   : > { %v3579_v30 = vld [vmem:[#allocation2] sm:$0xff] }
 0x123   : > { %v847_v31 = vsel %vm846_vm1, %v3579_v30, 0.0 }
 0x124   : > { %848 = vadd.xlane.f32.xlu0 %v847_v31 }
 0x1b1   : > { %v849_v32 = vpop.xlane.xlu0 %848 }
 0x1b2   : > { %v851_v33 = vmul.f32 0.03125, %v849_v32 }
 0x1b4   : > { %v852_v34 = vsub.f32 %v3579_v30, %v851_v33 }
 0x1b6   : > { %v853_v35 = vmul.f32 %v852_v34, %v852_v34 }
 0x1b8   : > { %v854_v36 = vsel %vm846_vm1, %v853_v35, 0.0 }
 0x1b9   : > { %855 = vadd.xlane.f32.xlu0 %v854_v36 }
 0x246   : > { %v856_v40 = vpop.xlane.xlu0 %855 }
 0x247   : > { %v857_v41 = vmul.f32 0.03125, %v856_v40 }
 0x249   : > { %v858_v42 = vadd.f32 1e-05, %v857_v41 }
 0x24b   : > { %3226 = vrsqrt.f32 %v858_v42 }
 0x255   : > { %v3227_v43 = vpop.eup %3226 }
 0x256   : > { %v860_v45 = vmul.f32 %v3227_v43, %v852_v34 }
 0x258   : > { %v867_v47 = vmul.f32 %v2742_v44, %v860_v45 }
 0x25a   : > { %v874_v48 = vadd.f32 %v2743_v46, %v867_v47 }
 0x25c   : > { %v875_v49 = vpack.c.bf16 %v874_v48, %v874_v48 }
 0x25e   : > { %2953 = vmatmul.mubr.msk.bf16.vlgmr.msra.gmra.mrb[0].mxu1 %vm846_vm1, %v875_v49 }
 0x25f   : > { %2958 = vmatprep.mubr.msk.bf16.mxu1 %vm3341_vm2, %v3340_v38 }
 0x331   : > { %v936_v51 = vpop.f32.mrb[0].mxu1 }
 0x332   : > { %v937_v52 = vadd.f32 %v2744_v50, %v936_v51  ;;  %v2954_v53 = vpop.f32.mrb[1].mxu1 }
 0x333   : > { %v939_v54 = vpop.f32.mrb[2].mxu1 }
 0x334   : > { %v942_v55 = vpack.c.bf16 %v937_v52, %v937_v52  ;;  %v2955_v56 = vpop.f32.mrb[3].mxu1 }
 0x336   : > { %944 = vst.msk [vmem:[#allocation3] sm:$0xf] %vm943_vm3, %v942_v55 }
 0x33d   : > { %v945_v57 = vld [vmem:[#allocation3] sm:$0xf] }
 0x33e   : > { %v2748_v58 = vcombine.low %v945_v57, %v945_v57  ;;  %v3622_v5 = vld [vmem:[#allocation3] ss:$0 sps:$4 sm:$0xff]  }
 0x33f   : > { %v3627_v11 = vld [vmem:[#allocation3] ss:$0 sps:$4 sm:$0xff]  }
 0x340   : > { %1011 = vrot.lane.b32.xlu0 %v2748_v58, %s4024_s29  ;;  %949 = vrot.lane.b32.xlu1 %v2748_v58, %s3343_s23  ;;  %v3635_v12 = vld [vmem:[#allocation3] ss:$0 sps:$4 sm:$0xff]   ;;  %s4026_s29 = smov 16  }
 0x3b2   : > { %v950_v59 = vpop.permute.xlu1 %949  ;;  %v1012_v61 = vpop.permute.xlu0 %1011 }
 0x3b3   : > { %v956_v60 = vsel %vm951_vm4, %v950_v59, 0  ;;  %v1018_v62 = vsel %vm1016_vm5, %v1012_v61, 0 }
 0x3b4   : > { %2957 = vmatpush3.bf16.xpose.msra.mxu1 %v956_v60 }
 0x3b5   : > { %2962 = vmatprep.subr.bf16.mxu1 %v3340_v38 }
 0x3bb   : > { %2959 = vmatmul.mubr.msk.bf16.vlgmr.msra.gmra.mrb[4].mxu1 %vm951_vm4, %v945_v57 }
 0x3bc   : > { %2963 = vmatpush3.bf16.msra.mxu1 %v1018_v62  ;;  %2964 = vmatprep.mubr.msk.bf16.mxu1 %vm3341_vm2, %v3340_v38 }
 0x3bd   : > { %2968 = vmatprep.subr.bf16.mxu1 %v3340_v38 }
 0x48e   : > { %v992_v63 = vpop.f32.mrb[4].mxu1 }
 0x48f   : > { %v998_v0 = vmul.f32 0.35355338, %v992_v63  ;;  %v2960_v1 = vpop.f32.mrb[5].mxu1 }
 0x490   : > { %v995_v2 = vpop.f32.mrb[6].mxu1 }
 0x491   : > { %v2961_v3 = vpop.f32.mrb[7].mxu1  ;;  %v999_v4 = vsel %vm951_vm4, %v998_v0, -inf }
 0x492   : > { %1000 = vmax.xlane.f32.xlu1 %v999_v4 }
 0x4a3   : > { %1193 = vrot.lane.b32.xlu1 %v3622_v5, %s3344_s20 }
 0x51f   : > { %v1001_v6 = vpop.xlane.xlu1 %1000 }
 0x520   : > { %v1002_v7 = vsub.f32 %v998_v0, %v1001_v6 }
 0x522   : > { %v1003_v8 = vmul.f32 1.442695, %v1002_v7 }
 0x523   : > { %v1194_v20 = vpop.permute.xlu1 %1193 }
 0x524   : > { %3228 = vpow2.f32 %v1003_v8  ;;  %v1199_v22 = vsel %vm951_vm4, %v1194_v20, 0 }
 0x52e   : > { %v3229_v9 = vpop.eup %3228 }
 0x52f   : > { %v1005_v10 = vsel %vm951_vm4, %v3229_v9, 0.0 }
 0x530   : > { %1006 = vadd.xlane.f32.xlu0 %v1005_v10 }
 0x546   : > { %1069 = vrot.lane.b32.xlu0 %v3627_v11, %s3345_s21 }
 0x54a   : > { %1067 = vrot.lane.b32.xlu0 %v3627_v11, %s3346_s2 }
 0x54e   : > { %1191 = vrot.lane.b32.xlu0 %v3622_v5, %s3347_s27 }
 0x552   : > { %1317 = vrot.lane.b32.xlu0 %v3635_v12, %s4028_s5 }
 0x556   : > { %1315 = vrot.lane.b32.xlu0 %v3635_v12, %s3349_s1 }
 0x5bd   : > { %v1007_v13 = vpop.xlane.xlu0 %1006 }
 0x5be   : > { %3230 = vrcp.f32 %v1007_v13 }
 0x5c1   : > { %v1070_v15 = vpop.permute.xlu0 %1069 }
 0x5c2   : > { %v1075_v18 = vsel %vm951_vm4, %v1070_v15, 0 }
 0x5c5   : > { %v1068_v19 = vpop.permute.xlu0 %1067 }
 0x5c8   : > { %v3231_v14 = vpop.eup %3230 }
 0x5c9   : > { %v1009_v16 = vmul.f32 %v3231_v14, %v3229_v9  ;;  %v1192_v21 = vpop.permute.xlu0 %1191 }
 0x5cb   : > { %v1010_v17 = vpack.c.bf16 %v1009_v16, %v1009_v16 }
 0x5cd   : > { %2965 = vmatmul.mubr.msk.bf16.vlgmr.msra.gmra.mrb[8].mxu1 %vm951_vm4, %v1010_v17  ;;  %v1318_v23 = vpop.permute.xlu0 %1317 }
 0x5ce   : > { %2969 = vmatpush3.bf16.xpose.msra.mxu1 %v1075_v18  ;;  %2970 = vmatprep.mubr.msk.bf16.mxu1 %vm3341_vm2, %v3340_v38  ;;  %v1323_v24 = vsel %vm951_vm4, %v1318_v23, 0 }
 0x5cf   : > { %2980 = vmatprep.subr.bf16.mxu1 %v3340_v38 }
 0x5d1   : > { %v1316_v25 = vpop.permute.xlu0 %1315 }
 0x5d5   : > { %2971 = vmatmul.mubr.msk.bf16.vlgmr.msra.gmra.mrb[12].mxu1 %vm951_vm4, %v1068_v19 }
 0x5d6   : > { %2981 = vmatpush3.bf16.xpose.msra.mxu1 %v1199_v22  ;;  %2982 = vmatprep.mubr.msk.bf16.mxu1 %vm3341_vm2, %v3340_v38 }
 0x5d7   : > { %2992 = vmatprep.subr.bf16.mxu1 %v3340_v38 }
 0x5dd   : > { %2983 = vmatmul.mubr.msk.bf16.vlgmr.msra.gmra.mrb[16].mxu1 %vm951_vm4, %v1192_v21 }
 0x5de   : > { %2993 = vmatpush3.bf16.xpose.msra.mxu1 %v1323_v24  ;;  %2994 = vmatprep.mubr.msk.bf16.mxu1 %vm3341_vm2, %v3340_v38 }
 0x5df   : > { %3004 = vmatprep.subr.bf16.mxu1 %v3340_v38 }
 0x5e5   : > { %2995 = vmatmul.mubr.msk.bf16.vlgmr.msra.gmra.mrb[20].mxu1 %vm951_vm4, %v1316_v25  ;;  %v3202_v25 = vld [vmem:[%s3997_s9] sm:$0xff]  }
 0x5e6   : > { %3008 = vmatprep.mubr.msk.bf16.mxu1 %vm3341_vm2, %v3340_v38  ;;  %3005 = vmatpush3.bf16.msra.mxu1 %v3202_v25 }
 0x5e7   : > { %3006 = vmatprep.subr.bf16.mxu1 %v3340_v38 }
 0x6a0   : > { %v1054_v26 = vpop.f32.mrb[8].mxu1 }
 0x6a1   : > { %v1060_v27 = vpack.c.bf16 %v1054_v26, %v1054_v26  ;;  %v2966_v28 = vpop.f32.mrb[9].mxu1 }
 0x6a2   : > { %v1057_v29 = vpop.f32.mrb[10].mxu1 }
 0x6a3   : > { %1062 = vst.msk [vmem:[#allocation4] sm:$0xf] %vm1061_vm6, %v1060_v27  ;;  %v2967_v31 = vpop.f32.mrb[11].mxu1  ;;  %v3203_v27 = vld [vmem:[%s3997_s9 + $0x8] sm:$0xff]  }
 0x6a4   : > { %3007 = vmatpush3.bf16.msra.mxu1 %v3203_v27 }
 0x6a5   : > { %3020 = vmatprep.subr.bf16.mxu1 %v3340_v38 }
 0x6a8   : > { %v1111_v32 = vpop.f32.mrb[12].mxu1 }
 0x6a9   : > { %v1117_v33 = vmul.f32 0.35355338, %v1111_v32  ;;  %v2972_v34 = vpop.f32.mrb[13].mxu1 }
 0x6aa   : > { %v1114_v35 = vpop.f32.mrb[14].mxu1 }
 0x6ab   : > { %v2973_v36 = vpop.f32.mrb[15].mxu1  ;;  %v1118_v37 = vsel %vm951_vm4, %v1117_v33, -inf }
 0x6ac   : > { %1119 = vmax.xlane.f32.xlu0 %v1118_v37 }
 0x6b0   : > { %v1235_v39 = vpop.f32.mrb[16].mxu1 }
 0x6b1   : > { %v1241_v40 = vmul.f32 0.35355338, %v1235_v39  ;;  %v2984_v41 = vpop.f32.mrb[17].mxu1 }
 0x6b2   : > { %v1238_v42 = vpop.f32.mrb[18].mxu1 }
 0x6b3   : > { %v2985_v43 = vpop.f32.mrb[19].mxu1  ;;  %v1242_v44 = vsel %vm951_vm4, %v1241_v40, -inf }
 0x6b4   : > { %1243 = vmax.xlane.f32.xlu1 %v1242_v44  ;;  %v2766_v44 = vld [vmem:[%s3998_s10] ss:$0 sm:$0xff] }
 0x6b8   : > { %v1359_v45 = vpop.f32.mrb[20].mxu1 }
 0x6b9   : > { %v1365_v46 = vmul.f32 0.35355338, %v1359_v45  ;;  %v2996_v47 = vpop.f32.mrb[21].mxu1 }
 0x6ba   : > { %v1362_v48 = vpop.f32.mrb[22].mxu1 }
 0x6bb   : > { %v2997_v49 = vpop.f32.mrb[23].mxu1  ;;  %v1366_v50 = vsel %vm951_vm4, %v1365_v46, -inf }
 0x6bc   : > { %1367 = vmax.xlane.f32.xlu0 %v1366_v50 }
 0x6c5   : > { %1254 = vrot.lane.b32.xlu1 %v3622_v5, %s4022_s28 }
 0x739   : > { %v1120_v51 = vpop.xlane.xlu0 %1119 }
 0x73a   : > { %v1121_v52 = vsub.f32 %v1117_v33, %v1120_v51 }
 0x73c   : > { %v1122_v53 = vmul.f32 1.442695, %v1121_v52 }
 0x73e   : > { %3232 = vpow2.f32 %v1122_v53 }
 0x741   : > { %v1244_v54 = vpop.xlane.xlu1 %1243 }
 0x742   : > { %v1245_v55 = vsub.f32 %v1241_v40, %v1244_v54 }
 0x744   : > { %v1246_v56 = vmul.f32 1.442695, %v1245_v55 }
 0x745   : > { %v1255_v5 = vpop.permute.xlu1 %1254 }
 0x746   : > { %3234 = vpow2.f32 %v1246_v56  ;;  %v3204_v56 = vld [vmem:[%s4001_s13] sm:$0xff]  }
 0x748   : > { %v3233_v57 = vpop.eup %3232 }
 0x749   : > { %v1368_v58 = vpop.xlane.xlu0 %1367  ;;  %v1124_v59 = vsel %vm951_vm4, %v3233_v57, 0.0 }
 0x74a   : > { %v1369_v60 = vsub.f32 %v1365_v46, %v1368_v58  ;;  %1125 = vadd.xlane.f32.xlu0 %v1124_v59 }
 0x74c   : > { %v1370_v61 = vmul.f32 1.442695, %v1369_v60 }
 0x74e   : > { %3236 = vpow2.f32 %v1370_v61  ;;  %v2767_v61 = vld [vmem:[%s3999_s11] ss:$0 sm:$0xff] }
 0x750   : > { %v3235_v62 = vpop.eup %3234 }
 0x751   : > { %v1248_v63 = vsel %vm951_vm4, %v3235_v62, 0.0 }
 0x752   : > { %1249 = vadd.xlane.f32.xlu0 %v1248_v63  ;;  %v2768_v63 = vld [vmem:[%s4000_s12] ss:$0 sm:$0xff] }
 0x758   : > { %v3237_v0 = vpop.eup %3236 }
 0x759   : > { %v1372_v1 = vsel %vm951_vm4, %v3237_v0, 0.0 }
 0x75a   : > { %1373 = vadd.xlane.f32.xlu1 %v1372_v1 }
 0x768   : > { %1130 = vrot.lane.b32.xlu0 %v3627_v11, %s4023_s22  ;;  %v1260_v11 = vsel %vm1016_vm5, %v1255_v5, 0  ;;  %v3208_v5 = vld [vmem:[%s4003_s15 + $0x10] sm:$0xff]  }
 0x76b   : > { %1378 = vrot.lane.b32.xlu1 %v3635_v12, %s4021_s30  ;;  %s4025_s30 = smov 24  }
 0x7d7   : > { %v1126_v2 = vpop.xlane.xlu0 %1125 }
 0x7d8   : > { %3238 = vrcp.f32 %v1126_v2 }
 0x7df   : > { %v1250_v3 = vpop.xlane.xlu0 %1249 }
 0x7e0   : > { %3240 = vrcp.f32 %v1250_v3  ;;  %v3206_v3 = vld [vmem:[%s4003_s15] sm:$0xff]  }
 0x7e2   : > { %v3239_v4 = vpop.eup %3238 }
 0x7e3   : > { %v1128_v6 = vmul.f32 %v3239_v4, %v3233_v57  ;;  %v1131_v7 = vpop.permute.xlu0 %1130  ;;  %v3207_v4 = vld [vmem:[%s4003_s15 + $0x8] sm:$0xff]  }
 0x7e4   : > { %v1136_v8 = vsel %vm1016_vm5, %v1131_v7, 0  ;;  %v2769_v7 = vld [vmem:[%s4002_s14] ss:$0 sm:$0xff] }
 0x7e5   : > { %2975 = vmatpush3.bf16.msra.mxu0 %v1136_v8  ;;  %v1129_v9 = vpack.c.bf16 %v1128_v6, %v1128_v6  ;;  %v3209_v6 = vld [vmem:[%s4003_s15 + $0x18] sm:$0xff]  }
 0x7e6   : > { %2986 = vmatprep.subr.bf16.mxu0 %v3340_v38 }
 0x7e7   : > { %v1374_v10 = vpop.xlane.xlu1 %1373 }
 0x7e8   : > { %3242 = vrcp.f32 %v1374_v10  ;;  %2977 = vmatmul.mubr.msk.bf16.vlgmr.msra.gmra.mrb[4].mxu0 %vm951_vm4, %v1129_v9 }
 0x7e9   : > { %2987 = vmatpush3.bf16.msra.mxu0 %v1260_v11  ;;  %2988 = vmatprep.mubr.msk.bf16.mxu0 %vm3341_vm2, %v3340_v38 }
 0x7ea   : > { %v3241_v12 = vpop.eup %3240  ;;  %2998 = vmatprep.subr.bf16.mxu0 %v3340_v38 }
 0x7eb   : > { %v1252_v13 = vmul.f32 %v3241_v12, %v3235_v62  ;;  %v1379_v14 = vpop.permute.xlu1 %1378 }
 0x7ec   : > { %v1384_v16 = vsel %vm1016_vm5, %v1379_v14, 0 }
 0x7ed   : > { %v1253_v15 = vpack.c.bf16 %v1252_v13, %v1252_v13 }
 0x7f0   : > { %2989 = vmatmul.mubr.msk.bf16.vlgmr.msra.gmra.mrb[8].mxu0 %vm951_vm4, %v1253_v15 }
 0x7f1   : > { %2999 = vmatpush3.bf16.msra.mxu0 %v1384_v16  ;;  %3000 = vmatprep.mubr.msk.bf16.mxu0 %vm3341_vm2, %v3340_v38 }
 0x7f2   : > { %v3243_v17 = vpop.eup %3242  ;;  %3012 = vmatprep.subr.bf16.mxu0 %v3340_v38 }
 0x7f3   : > { %v1376_v18 = vmul.f32 %v3243_v17, %v3237_v0 }
 0x7f5   : > { %v1377_v19 = vpack.c.bf16 %v1376_v18, %v1376_v18 }
 0x7f8   : > { %3001 = vmatmul.mubr.msk.bf16.vlgmr.msra.gmra.mrb[12].mxu0 %vm951_vm4, %v1377_v19 }
 0x7f9   : > { %3016 = vmatprep.mubr.msk.bf16.mxu0 %vm3341_vm2, %v3340_v38  ;;  %3013 = vmatpush3.bf16.msra.mxu0 %v3204_v56 }
 0x7fa   : > { %3014 = vmatprep.subr.bf16.mxu0 %v3340_v38 }
 0x8bb   : > { %v1172_v20 = vpop.f32.mrb[4].mxu0 }
 0x8bc   : > { %v2857_v21 = vpack.c.bf16 %v1172_v20, %v1172_v20  ;;  %v2978_v22 = vpop.f32.mrb[5].mxu0  ;;  %v2779_v20 = vld [vmem:[%s4004_s16] ss:$0 sm:$0xff] }
 0x8bd   : > { %v1175_v23 = vpop.f32.mrb[6].mxu0 }
 0x8be   : > { %1182 = vrot.lane.b32.xlu1 %v2857_v21, %s4027_s4  ;;  %v2979_v24 = vpop.f32.mrb[7].mxu0  ;;  %s2853_s4 = sshll.u32 %s3488_s3, 6 }
 0x8c3   : > { %v1296_v26 = vpop.f32.mrb[8].mxu0 }
 0x8c4   : > { %v2858_v28 = vpack.c.bf16 %v1296_v26, %v1296_v26  ;;  %v2990_v29 = vpop.f32.mrb[9].mxu0 }
 0x8c5   : > { %v1299_v31 = vpop.f32.mrb[10].mxu0 }
 0x8c6   : > { %1306 = vrot.lane.b32.xlu0 %v2858_v28, %s4026_s29  ;;  %v2991_v32 = vpop.f32.mrb[11].mxu0  ;;  %s4060_s29 = sld [smem:[#allocation21_spill]] }
 0x8cb   : > { %v1420_v33 = vpop.f32.mrb[12].mxu0 }
 0x8cc   : > { %v2859_v34 = vpack.c.bf16 %v1420_v33, %v1420_v33  ;;  %v3002_v35 = vpop.f32.mrb[13].mxu0 }
 0x8cd   : > { %v1423_v36 = vpop.f32.mrb[14].mxu0  ;;  %v3211_v35 = vld [vmem:[%s3995_s7 + $0x18] sm:$0xff]  }
 0x8ce   : > { %1430 = vrot.lane.b32.xlu1 %v2859_v34, %s4025_s30  ;;  %v3003_v37 = vpop.f32.mrb[15].mxu0  ;;  %v3210_v34 = vld [vmem:[%s3995_s7 + $0x10] sm:$0xff]   ;;  %s4058_s30 = smov 16  }
 0x930   : > { %v1183_v39 = vpop.permute.xlu1 %1182 }
 0x931   : > { %1186 = vst.msk [vmem:[#allocation4] sm:$0xf] %vm1185_vm7, %v1183_v39 }
 0x938   : > { %v1307_v40 = vpop.permute.xlu0 %1306 }
 0x939   : > { %1310 = vst.msk [vmem:[#allocation4] sm:$0xf] %vm1309_vm8, %v1307_v40 }
 0x940   : > { %v1431_v41 = vpop.permute.xlu1 %1430 }
 0x941   : > { %1434 = vst.msk [vmem:[#allocation4] sm:$0xf] %vm1433_vm9, %v1431_v41  ;;  %v2782_v41 = vld [vmem:[%s4051_s0 + $0x1] ss:$0 sm:$0xff] }
 0x948   : > { %v1435_v42 = vld [vmem:[#allocation4] sm:$0xf] }
 0x949   : > { %3009 = vmatmul.mubr.msk.bf16.vlgmr.msra.gmra.mrb[24].mxu1 %vm846_vm1, %v1435_v42 }
 0x94a   : > { %3028 = vmatprep.mubr.msk.bf16.mxu1 %vm3341_vm2, %v3340_v38  ;;  %3021 = vmatpush3.bf16.msra.mxu1 %v3206_v3 }
 0x94b   : > { %3022 = vmatprep.subr.bf16.mxu1 %v3340_v38 }
 0x94e   : > { %3023 = vmatpush3.bf16.msra.mxu1 %v3207_v4 }
 0x94f   : > { %3024 = vmatprep.subr.bf16.mxu1 %v3340_v38 }
 0x952   : > { %3025 = vmatpush3.bf16.msra.mxu1 %v3208_v5 }
 0x953   : > { %3026 = vmatprep.subr.bf16.mxu1 %v3340_v38 }
 0x956   : > { %3027 = vmatpush3.bf16.msra.mxu1 %v3209_v6 }
 0x957   : > { %3046 = vmatprep.subr.bf16.mxu1 %v3340_v38 }
 0xa1c   : > { %v1489_v43 = vpop.f32.mrb[24].mxu1 }
 0xa1d   : > { %v1495_v45 = vadd.f32 %v1489_v43, %v3579_v30  ;;  %v3010_v46 = vpop.f32.mrb[25].mxu1  ;;  %v3205_v30 = vld [vmem:[%s4001_s13 + $0x8] sm:$0xff]   ;;  %v2783_v43 = vld [vmem:[%s3994_s6 + $0x1] ss:$0 sm:$0xff] }
 0xa1e   : > { %v1492_v47 = vpop.f32.mrb[26].mxu1  ;;  %3015 = vmatpush3.bf16.msra.mxu0 %v3205_v30 }
 0xa1f   : > { %v1503_v48 = vadd.f32 %v2766_v44, %v1495_v45  ;;  %v3011_v49 = vpop.f32.mrb[27].mxu1  ;;  %3032 = vmatprep.subr.bf16.mxu0 %v3340_v38  ;;  %v2789_v47 = vld [vmem:[%s3996_s8 + $0x1] ss:$0 sm:$0xff] }
 0xa21   : > { %v1506_v50 = vsel %vm846_vm1, %v1503_v48, 0.0 }
 0xa22   : > { %1507 = vadd.xlane.f32.xlu0 %v1506_v50 }
 0xaaf   : > { %v1508_v51 = vpop.xlane.xlu0 %1507 }
 0xab0   : > { %v1509_v52 = vmul.f32 0.03125, %v1508_v51 }
 0xab2   : > { %v1510_v53 = vsub.f32 %v1503_v48, %v1509_v52 }
 0xab4   : > { %v1511_v54 = vmul.f32 %v1510_v53, %v1510_v53 }
 0xab6   : > { %v1512_v55 = vsel %vm846_vm1, %v1511_v54, 0.0 }
 0xab7   : > { %1513 = vadd.xlane.f32.xlu1 %v1512_v55 }
 0xb44   : > { %v1514_v57 = vpop.xlane.xlu1 %1513 }
 0xb45   : > { %v1515_v58 = vmul.f32 0.03125, %v1514_v57 }
 0xb47   : > { %v1516_v59 = vadd.f32 1e-05, %v1515_v58 }
 0xb49   : > { %3244 = vrsqrt.f32 %v1516_v59 }
 0xb53   : > { %v3245_v60 = vpop.eup %3244 }
 0xb54   : > { %v1518_v62 = vmul.f32 %v3245_v60, %v1510_v53 }
 0xb56   : > { %v1525_v0 = vmul.f32 %v2767_v61, %v1518_v62 }
 0xb58   : > { %v1532_v1 = vadd.f32 %v2768_v63, %v1525_v0 }
 0xb5a   : > { %v1533_v2 = vpack.c.bf16 %v1532_v1, %v1532_v1 }
 0xb5c   : > { %3017 = vmatmul.mubr.msk.bf16.vlgmr.msra.gmra.mrb[16].mxu0 %vm846_vm1, %v1533_v2 }
 0xb5d   : > { %3036 = vmatprep.mubr.msk.bf16.mxu0 %vm3341_vm2, %v3340_v38  ;;  %3033 = vmatpush3.bf16.msra.mxu0 %v3210_v34 }
 0xb5e   : > { %3034 = vmatprep.subr.bf16.mxu0 %v3340_v38 }
 0xb61   : > { %3035 = vmatpush3.bf16.msra.mxu0 %v3211_v35 }
 0xb62   : > { %3040 = vmatprep.subr.bf16.mxu0 %v3340_v38 }
 0xc2f   : > { %v1594_v8 = vpop.f32.mrb[16].mxu0 }
 0xc30   : > { %v1595_v9 = vadd.f32 %v2769_v7, %v1594_v8  ;;  %v3018_v10 = vpop.f32.mrb[17].mxu0 }
 0xc31   : > { %v1597_v11 = vpop.f32.mrb[18].mxu0 }
 0xc32   : > { %v2773_v12 = vmul.f32 -1.442695, %v1595_v9  ;;  %v3019_v13 = vpop.f32.mrb[19].mxu0 }
 0xc34   : > { %3246 = vpow2.f32 %v2773_v12 }
 0xc3e   : > { %v3247_v14 = vpop.eup %3246 }
 0xc3f   : > { %v1603_v15 = vadd.f32 1.0, %v3247_v14 }
 0xc41   : > { %3248 = vrcp.f32 %v1603_v15 }
 0xc4b   : > { %v3249_v16 = vpop.eup %3248 }
 0xc4c   : > { %v1606_v17 = vmul.f32 %v3249_v16, %v1595_v9 }
 0xc4e   : > { %v1607_v18 = vpack.c.bf16 %v1606_v17, %v1606_v17 }
 0xc50   : > { %3029 = vmatmul.mubr.msk.bf16.vlgmr.msra.gmra.mrb[28].mxu1 %vm1640_vm10, %v1607_v18 }
 0xc51   : > { %3048 = vmatprep.mubr.msk.bf16.mxu1 %vm3341_vm2, %v3340_v38 }
 0xd23   : > { %v1678_v19 = vpop.f32.mrb[28].mxu1 }
 0xd24   : > { %v1684_v21 = vadd.f32 %v1678_v19, %v1503_v48  ;;  %v3030_v22 = vpop.f32.mrb[29].mxu1 }
 0xd25   : > { %v1681_v23 = vpop.f32.mrb[30].mxu1 }
 0xd26   : > { %v1692_v24 = vadd.f32 %v2779_v20, %v1684_v21  ;;  %v3031_v25 = vpop.f32.mrb[31].mxu1 }
 0xd28   : > { %1693 = vst.msk [vmem:[#allocation2] sm:$0xff] %vm846_vm1, %v1692_v24 }
 0xd2f   : > { %v3753_v26 = vld [vmem:[#allocation2] sm:$0xff] }
 0xd30   : > { %v1699_v27 = vsel %vm846_vm1, %v3753_v26, 0.0 }
 0xd31   : > { %1700 = vadd.xlane.f32.xlu0 %v1699_v27 }
 0xdbe   : > { %v1701_v28 = vpop.xlane.xlu0 %1700 }
 0xdbf   : > { %v1702_v29 = vmul.f32 0.03125, %v1701_v28 }
 0xdc1   : > { %v1703_v31 = vsub.f32 %v3753_v26, %v1702_v29 }
 0xdc3   : > { %v1704_v32 = vmul.f32 %v1703_v31, %v1703_v31 }
 0xdc5   : > { %v1705_v33 = vsel %vm846_vm1, %v1704_v32, 0.0 }
 0xdc6   : > { %1706 = vadd.xlane.f32.xlu0 %v1705_v33 }
 0xe53   : > { %v1707_v36 = vpop.xlane.xlu0 %1706 }
 0xe54   : > { %v1708_v37 = vmul.f32 0.03125, %v1707_v36 }
 0xe56   : > { %v1709_v39 = vadd.f32 1e-05, %v1708_v37 }
 0xe58   : > { %3250 = vrsqrt.f32 %v1709_v39 }
 0xe62   : > { %v3251_v40 = vpop.eup %3250 }
 0xe63   : > { %v1711_v42 = vmul.f32 %v3251_v40, %v1703_v31 }
 0xe65   : > { %v1718_v44 = vmul.f32 %v2782_v41, %v1711_v42 }
 0xe67   : > { %v1725_v45 = vadd.f32 %v2783_v43, %v1718_v44 }
 0xe69   : > { %v1726_v46 = vpack.c.bf16 %v1725_v45, %v1725_v45 }
 0xe6b   : > { %3037 = vmatmul.mubr.msk.bf16.vlgmr.msra.gmra.mrb[20].mxu0 %vm846_vm1, %v1726_v46 }
 0xe6c   : > { %3042 = vmatprep.mubr.msk.bf16.mxu0 %vm3341_vm2, %v3340_v38 }
 0xf3e   : > { %v1789_v48 = vpop.f32.mrb[20].mxu0 }
 0xf3f   : > { %v1790_v49 = vadd.f32 %v2789_v47, %v1789_v48  ;;  %v3038_v50 = vpop.f32.mrb[21].mxu0 }
 0xf40   : > { %v1792_v51 = vpop.f32.mrb[22].mxu0 }
 0xf41   : > { %v1795_v52 = vpack.c.bf16 %v1790_v49, %v1790_v49  ;;  %v3039_v53 = vpop.f32.mrb[23].mxu0 }
 0xf43   : > { %1796 = vst.msk [vmem:[#allocation3] sm:$0xf] %vm943_vm3, %v1795_v52 }
 0xf4a   : > { %v3780_v54 = vld [vmem:[#allocation3] ss:$0 sps:$4 sm:$0xff]  }
 0xf4b   : > { %v1797_v55 = vld [vmem:[#allocation3] sm:$0xf]  ;;  %1918 = vrot.lane.b32.xlu1 %v3780_v54, %s3345_s21  ;;  %s4052_s21 = smov 72  }
 0xf4c   : > { %v3782_v56 = vcombine.low %v1797_v55, %v1797_v55  ;;  %v3788_v30 = vld [vmem:[#allocation3] ss:$0 sps:$4 sm:$0xff]  }
 0xf4d   : > { %v3794_v57 = vld [vmem:[#allocation3] ss:$0 sps:$4 sm:$0xff]  }
 0xf4e   : > { %1801 = vrot.lane.b32.xlu0 %v3782_v56, %s3343_s23  ;;  %s4053_s23 = smov 64  }
 0xf4f   : > { %1916 = vrot.lane.b32.xlu1 %v3780_v54, %s3346_s2  ;;  %s4055_s2 = smov 48  }
 0xf52   : > { %2039 = vrot.lane.b32.xlu0 %v3788_v30, %s3347_s27  ;;  %s4056_s27 = smov 40  }
 0xf53   : > { %2041 = vrot.lane.b32.xlu1 %v3788_v30, %s3344_s20  ;;  %s4054_s20 = smov 56  }
 0xf56   : > { %2162 = vrot.lane.b32.xlu0 %v3794_v57, %s3349_s1  ;;  %s4057_s1 = smov 8  }
 0xf57   : > { %2164 = vrot.lane.b32.xlu1 %v3794_v57, %s4052_s21 }
 0xfbd   : > { %v1919_v60 = vpop.permute.xlu1 %1918 }
 0xfbe   : > { %v1924_v62 = vsel %vm951_vm4, %v1919_v60, 0 }
 0xfc0   : > { %v1802_v58 = vpop.permute.xlu0 %1801 }
 0xfc1   : > { %v1807_v59 = vsel %vm951_vm4, %v1802_v58, 0  ;;  %v1917_v61 = vpop.permute.xlu1 %1916 }
 0xfc2   : > { %3041 = vmatpush3.bf16.xpose.msra.mxu0 %v1807_v59 }
 0xfc3   : > { %3052 = vmatprep.subr.bf16.mxu0 %v3340_v38 }
 0xfc4   : > { %v2040_v2 = vpop.permute.xlu0 %2039 }
 0xfc5   : > { %v2042_v63 = vpop.permute.xlu1 %2041 }
 0xfc6   : > { %v2047_v0 = vsel %vm951_vm4, %v2042_v63, 0 }
 0xfc8   : > { %v2163_v4 = vpop.permute.xlu0 %2162 }
 0xfc9   : > { %3043 = vmatmul.mubr.msk.bf16.vlgmr.msra.gmra.mrb[24].mxu0 %vm951_vm4, %v1797_v55  ;;  %v2165_v1 = vpop.permute.xlu1 %2164 }
 0xfca   : > { %3053 = vmatpush3.bf16.xpose.msra.mxu0 %v1924_v62  ;;  %3054 = vmatprep.mubr.msk.bf16.mxu0 %vm3341_vm2, %v3340_v38  ;;  %v2170_v3 = vsel %vm951_vm4, %v2165_v1, 0 }
 0xfcb   : > { %3064 = vmatprep.subr.bf16.mxu0 %v3340_v38 }
 0xfd1   : > { %3055 = vmatmul.mubr.msk.bf16.vlgmr.msra.gmra.mrb[28].mxu0 %vm951_vm4, %v1917_v61 }
 0xfd2   : > { %3065 = vmatpush3.bf16.xpose.msra.mxu0 %v2047_v0  ;;  %3066 = vmatprep.mubr.msk.bf16.mxu0 %vm3341_vm2, %v3340_v38 }
 0xfd3   : > { %3076 = vmatprep.subr.bf16.mxu0 %v3340_v38 }
 0xfd9   : > { %3067 = vmatmul.mubr.msk.bf16.vlgmr.msra.gmra.mrb[32].mxu0 %vm951_vm4, %v2040_v2 }
 0xfda   : > { %3077 = vmatpush3.bf16.xpose.msra.mxu0 %v2170_v3  ;;  %3078 = vmatprep.mubr.msk.bf16.mxu0 %vm3341_vm2, %v3340_v38 }
 0xfdb   : > { %3088 = vmatprep.subr.bf16.mxu0 %v3340_v38 }
 0xfe1   : > { %3079 = vmatmul.mubr.msk.bf16.vlgmr.msra.gmra.mrb[36].mxu0 %vm951_vm4, %v2163_v4 }
 0xfe2   : > { %3092 = vmatprep.mubr.msk.bf16.mxu0 %vm3341_vm2, %v3340_v38 }
0x109c   : > { %v1843_v5 = vpop.f32.mrb[24].mxu0 }
0x109d   : > { %v1849_v6 = vmul.f32 0.35355338, %v1843_v5  ;;  %v3044_v7 = vpop.f32.mrb[25].mxu0 }
0x109e   : > { %v1846_v8 = vpop.f32.mrb[26].mxu0 }
0x109f   : > { %v3045_v9 = vpop.f32.mrb[27].mxu0  ;;  %v1850_v10 = vsel %vm951_vm4, %v1849_v6, -inf }
0x10a0   : > { %1851 = vmax.xlane.f32.xlu1 %v1850_v10 }
0x10a4   : > { %v1960_v11 = vpop.f32.mrb[28].mxu0 }
0x10a5   : > { %v1966_v12 = vmul.f32 0.35355338, %v1960_v11  ;;  %v3056_v13 = vpop.f32.mrb[29].mxu0 }
0x10a6   : > { %v1963_v14 = vpop.f32.mrb[30].mxu0 }
0x10a7   : > { %v3057_v15 = vpop.f32.mrb[31].mxu0  ;;  %v1967_v16 = vsel %vm951_vm4, %v1966_v12, -inf }
0x10a8   : > { %1968 = vmax.xlane.f32.xlu0 %v1967_v16 }
0x10ac   : > { %v2083_v17 = vpop.f32.mrb[32].mxu0 }
0x10ad   : > { %v2089_v18 = vmul.f32 0.35355338, %v2083_v17  ;;  %v3068_v19 = vpop.f32.mrb[33].mxu0 }
0x10ae   : > { %v2086_v20 = vpop.f32.mrb[34].mxu0 }
0x10af   : > { %v3069_v21 = vpop.f32.mrb[35].mxu0  ;;  %v2090_v22 = vsel %vm951_vm4, %v2089_v18, -inf }
0x10b0   : > { %2091 = vmax.xlane.f32.xlu0 %v2090_v22  ;;  %v3216_v21 = vld [vmem:[%s3997_s9 + $0x10] sm:$0xff]  }
0x10b1   : > { %3089 = vmatpush3.bf16.msra.mxu0 %v3216_v21 }
0x10b2   : > { %3090 = vmatprep.subr.bf16.mxu0 %v3340_v38 }
0x10b4   : > { %v2206_v23 = vpop.f32.mrb[36].mxu0 }
0x10b5   : > { %v2212_v24 = vmul.f32 0.35355338, %v2206_v23  ;;  %v3080_v25 = vpop.f32.mrb[37].mxu0  ;;  %v3217_v23 = vld [vmem:[%s3997_s9 + $0x18] sm:$0xff]  }
0x10b6   : > { %v2209_v27 = vpop.f32.mrb[38].mxu0  ;;  %3091 = vmatpush3.bf16.msra.mxu0 %v3217_v23 }
0x10b7   : > { %v3081_v28 = vpop.f32.mrb[39].mxu0  ;;  %v2213_v29 = vsel %vm951_vm4, %v2212_v24, -inf  ;;  %3104 = vmatprep.subr.bf16.mxu0 %v3340_v38 }
0x10b8   : > { %2214 = vmax.xlane.f32.xlu0 %v2213_v29 }
0x112d   : > { %v1852_v31 = vpop.xlane.xlu1 %1851 }
0x112e   : > { %v1853_v32 = vsub.f32 %v1849_v6, %v1852_v31 }
0x1130   : > { %v1854_v33 = vmul.f32 1.442695, %v1853_v32 }
0x1132   : > { %3252 = vpow2.f32 %v1854_v33 }
0x1135   : > { %v1969_v34 = vpop.xlane.xlu0 %1968 }
0x1136   : > { %v1970_v35 = vsub.f32 %v1966_v12, %v1969_v34 }
0x1138   : > { %v1971_v36 = vmul.f32 1.442695, %v1970_v35 }
0x113a   : > { %3254 = vpow2.f32 %v1971_v36 }
0x113c   : > { %v3253_v37 = vpop.eup %3252 }
0x113d   : > { %v1856_v39 = vsel %vm951_vm4, %v3253_v37, 0.0  ;;  %v2092_v40 = vpop.xlane.xlu0 %2091 }
0x113e   : > { %1857 = vadd.xlane.f32.xlu1 %v1856_v39  ;;  %v2093_v48 = vsub.f32 %v2089_v18, %v2092_v40 }
0x1140   : > { %v2094_v49 = vmul.f32 1.442695, %v2093_v48 }
0x1144   : > { %v3255_v41 = vpop.eup %3254 }
0x1145   : > { %v2215_v42 = vpop.xlane.xlu0 %2214  ;;  %v1973_v43 = vsel %vm951_vm4, %v3255_v41, 0.0 }
0x1146   : > { %v2216_v44 = vsub.f32 %v2212_v24, %v2215_v42  ;;  %1974 = vadd.xlane.f32.xlu0 %v1973_v43 }
0x1148   : > { %v2217_v45 = vmul.f32 1.442695, %v2216_v44 }
0x114a   : > { %3256 = vpow2.f32 %v2217_v45 }
0x114b   : > { %3258 = vpow2.f32 %v2094_v49 }
0x114f   : > { %1862 = vrot.lane.b32.xlu1 %v3782_v56, %s4053_s23  ;;  %s4062_s23 = sld [smem:[#allocation22_spill]] }
0x1154   : > { %v3257_v46 = vpop.eup %3256 }
0x1155   : > { %v2219_v47 = vsel %vm951_vm4, %v3257_v46, 0.0  ;;  %v3259_v50 = vpop.eup %3258 }
0x1156   : > { %2220 = vadd.xlane.f32.xlu0 %v2219_v47  ;;  %v2096_v51 = vsel %vm951_vm4, %v3259_v50, 0.0 }
0x116c   : > { %1979 = vrot.lane.b32.xlu0 %v3780_v54, %s4054_s20  ;;  %s3946_s20 = scalar_lea.hbm %s4062_s23, %s2853_s4 }
0x1173   : > { %2097 = vadd.xlane.f32.xlu1 %v2096_v51 }
0x1184   : > { %2102 = vrot.lane.b32.xlu1 %v3788_v30, %s4055_s2  ;;  %s647_s2 = sand.u32 1, %s3330_s25  }
0x1188   : > { %2225 = vrot.lane.b32.xlu1 %v3794_v57, %s4056_s27  ;;  %s2722_s27 = sshll.u32 %s647_s2, 2 }
0x11cb   : > { %v1858_v52 = vpop.xlane.xlu1 %1857 }
0x11cc   : > { %3260 = vrcp.f32 %v1858_v52 }
0x11cf   : > { %v1863_v53 = vpop.permute.xlu1 %1862 }
0x11d0   : > { %v1868_v55 = vsel %vm1016_vm5, %v1863_v53, 0  ;;  %v3218_v53 = vld [vmem:[%s4001_s13 + $0x10] sm:$0xff]  }
0x11d1   : > { %3047 = vmatpush3.bf16.msra.mxu1 %v1868_v55 }
0x11d2   : > { %3058 = vmatprep.subr.bf16.mxu1 %v3340_v38 }
0x11d3   : > { %v1975_v54 = vpop.xlane.xlu0 %1974 }
0x11d4   : > { %3262 = vrcp.f32 %v1975_v54 }
0x11d6   : > { %v3261_v56 = vpop.eup %3260 }
0x11d7   : > { %v1860_v58 = vmul.f32 %v3261_v56, %v3253_v37 }
0x11d9   : > { %v1861_v59 = vpack.c.bf16 %v1860_v58, %v1860_v58 }
0x11db   : > { %3049 = vmatmul.mubr.msk.bf16.vlgmr.msra.gmra.mrb[32].mxu1 %vm951_vm4, %v1861_v59  ;;  %v2819_v59 = vld [vmem:[%s3999_s11 + $0x1] ss:$0 sm:$0xff] }
0x11dc   : > { %3060 = vmatprep.mubr.msk.bf16.mxu1 %vm3341_vm2, %v3340_v38 }
0x11de   : > { %v3263_v30 = vpop.eup %3262 }
0x11df   : > { %v1977_v60 = vmul.f32 %v3263_v30, %v3255_v41  ;;  %v2816_v41 = vld [vmem:[%s3998_s10 + $0x1] ss:$0 sm:$0xff] }
0x11e1   : > { %v1978_v63 = vpack.c.bf16 %v1977_v60, %v1977_v60 }
0x11e3   : > { %v2221_v57 = vpop.xlane.xlu0 %2220 }
0x11e7   : > { %v1980_v61 = vpop.permute.xlu0 %1979 }
0x11e8   : > { %v1985_v62 = vsel %vm1016_vm5, %v1980_v61, 0 }
0x11e9   : > { %3059 = vmatpush3.bf16.msra.mxu1 %v1985_v62 }
0x11ea   : > { %3070 = vmatprep.subr.bf16.mxu1 %v3340_v38 }
0x11ec   : > { %3061 = vmatmul.mubr.msk.bf16.vlgmr.msra.gmra.mrb[36].mxu1 %vm951_vm4, %v1978_v63  ;;  %v3220_v63 = vld [vmem:[%s4003_s15 + $0x20] sm:$0xff]  }
0x11ed   : > { %3072 = vmatprep.mubr.msk.bf16.mxu1 %vm3341_vm2, %v3340_v38 }
0x1200   : > { %v2098_v0 = vpop.xlane.xlu1 %2097 }
0x1201   : > { %3264 = vrcp.f32 %v2098_v0  ;;  %v3221_v0 = vld [vmem:[%s4003_s15 + $0x28] sm:$0xff]  }
0x1202   : > { %3266 = vrcp.f32 %v2221_v57  ;;  %v2820_v57 = vld [vmem:[%s4000_s12 + $0x1] ss:$0 sm:$0xff] }
0x1204   : > { %v2103_v1 = vpop.permute.xlu1 %2102 }
0x1205   : > { %v2108_v2 = vsel %vm1016_vm5, %v2103_v1, 0  ;;  %v3222_v1 = vld [vmem:[%s4003_s15 + $0x30] sm:$0xff]  }
0x1206   : > { %3071 = vmatpush3.bf16.msra.mxu1 %v2108_v2  ;;  %v3223_v2 = vld [vmem:[%s4003_s15 + $0x38] sm:$0xff]  }
0x1207   : > { %3082 = vmatprep.subr.bf16.mxu1 %v3340_v38 }
0x1208   : > { %v2226_v5 = vpop.permute.xlu1 %2225 }
0x1209   : > { %v2231_v8 = vsel %vm1016_vm5, %v2226_v5, 0 }
0x120b   : > { %v3265_v3 = vpop.eup %3264 }
0x120c   : > { %v2100_v4 = vmul.f32 %v3265_v3, %v3259_v50  ;;  %v3267_v7 = vpop.eup %3266  ;;  %v2826_v3 = vld [vmem:[%s4002_s14 + $0x1] ss:$0 sm:$0xff] }
0x120d   : > { %v2223_v9 = vmul.f32 %v3267_v7, %v3257_v46 }
0x120e   : > { %v2101_v6 = vpack.c.bf16 %v2100_v4, %v2100_v4 }
0x120f   : > { %v2224_v10 = vpack.c.bf16 %v2223_v9, %v2223_v9 }
0x1210   : > { %3073 = vmatmul.mubr.msk.bf16.vlgmr.msra.gmra.mrb[40].mxu1 %vm951_vm4, %v2101_v6 }
0x1211   : > { %3083 = vmatpush3.bf16.msra.mxu1 %v2231_v8  ;;  %3084 = vmatprep.mubr.msk.bf16.mxu1 %vm3341_vm2, %v3340_v38 }
0x1212   : > { %3096 = vmatprep.subr.bf16.mxu1 %v3340_v38 }
0x1218   : > { %3085 = vmatmul.mubr.msk.bf16.vlgmr.msra.gmra.mrb[44].mxu1 %vm951_vm4, %v2224_v10 }
0x1219   : > { %3100 = vmatprep.mubr.msk.bf16.mxu1 %vm3341_vm2, %v3340_v38  ;;  %3097 = vmatpush3.bf16.msra.mxu1 %v3218_v53 }
0x121a   : > { %3098 = vmatprep.subr.bf16.mxu1 %v3340_v38 }
0x12ae   : > { %v1904_v11 = vpop.f32.mrb[32].mxu1 }
0x12af   : > { %v1910_v12 = vpack.c.bf16 %v1904_v11, %v1904_v11  ;;  %v3050_v13 = vpop.f32.mrb[33].mxu1 }
0x12b0   : > { %v1907_v14 = vpop.f32.mrb[34].mxu1 }
0x12b1   : > { %1911 = vst.msk [vmem:[#allocation4] sm:$0xf] %vm1061_vm6, %v1910_v12  ;;  %v3051_v15 = vpop.f32.mrb[35].mxu1 }
0x12bf   : > { %v2021_v16 = vpop.f32.mrb[36].mxu1 }
0x12c0   : > { %v2860_v17 = vpack.c.bf16 %v2021_v16, %v2021_v16  ;;  %v3062_v18 = vpop.f32.mrb[37].mxu1  ;;  %v2845_v16 = vld [vmem:[%s4004_s16 + $0x1] ss:$0 sm:$0xff] }
0x12c1   : > { %v2024_v19 = vpop.f32.mrb[38].mxu1 }
0x12c2   : > { %2031 = vrot.lane.b32.xlu1 %v2860_v17, %s4057_s1  ;;  %v3063_v20 = vpop.f32.mrb[39].mxu1  ;;  %s2646_s1 = scalar_lea.sflag [#allocation6], %s647_s2 }
0x12e3   : > { %v2144_v22 = vpop.f32.mrb[40].mxu1 }
0x12e4   : > { %v2861_v24 = vpack.c.bf16 %v2144_v22, %v2144_v22  ;;  %v3074_v25 = vpop.f32.mrb[41].mxu1 }
0x12e5   : > { %v2147_v27 = vpop.f32.mrb[42].mxu1 }
0x12e6   : > { %2154 = vrot.lane.b32.xlu0 %v2861_v24, %s4058_s30  ;;  %v3075_v28 = vpop.f32.mrb[43].mxu1  ;;  %s649_s30 = scalar_lea.vmem [#allocation5], %s2722_s27  ;;  %s3356_s27 = smov [#allocation5]  }
0x12e7   : > { %s3280_s22 = sshll.u32 %s3356_s27, 4  ;;  %s3281_s22 = int_to_ptr.vmem [resolvable:$false] %s3280_s22 }
0x12eb   : > { %v2267_v29 = vpop.f32.mrb[44].mxu1 }
0x12ec   : > { %v2862_v31 = vpack.c.bf16 %v2267_v29, %v2267_v29  ;;  %v3086_v32 = vpop.f32.mrb[45].mxu1 }
0x12ed   : > { %v2270_v33 = vpop.f32.mrb[46].mxu1  ;;  %v3225_v32 = vld [vmem:[%s4007_s19 + $0x8] sm:$0xff]  }
0x12ee   : > { %2277 = vrot.lane.b32.xlu1 %v2862_v31, %s4059_s26  ;;  %v3087_v34 = vpop.f32.mrb[47].mxu1  ;;  %v3224_v31 = vld [vmem:[%s4007_s19] sm:$0xff]   ;;  %s2659_s26 = sshll.u32 %s649_s30, 4  ;;  %s3948_s26 = int_to_ptr.vmem [resolvable:$true] %s2659_s26 }
0x12ef   : > { %s3276_s3 = scalar_lea.vmem %s3948_s26, 64  ;;  %p3283_p0 = scmp.lt.s32.totalorder %s3948_s26, %s3281_s22 }
0x12f0   : > { %p3277_p11 = scmp.ne.s32.totalorder %s3948_s26, %s3276_s3 }
0x12f2   : > { %p3278_p12 = pnand %p3277_p11, %p3505_p5 }
0x12f4   : > { %p3279_p13 = pneg %p3278_p12 }
0x1334   : > { %v2032_v35 = vpop.permute.xlu1 %2031 }
0x1335   : > { %2034 = vst.msk [vmem:[#allocation4] sm:$0xf] %vm1185_vm7, %v2032_v35 }
0x1358   : > { %v2155_v36 = vpop.permute.xlu0 %2154 }
0x1359   : > { %2157 = vst.msk [vmem:[#allocation4] sm:$0xf] %vm1309_vm8, %v2155_v36 }
0x1360   : > { %v2278_v37 = vpop.permute.xlu1 %2277 }
0x1361   : > { %2280 = vst.msk [vmem:[#allocation4] sm:$0xf] %vm1433_vm9, %v2278_v37  ;;  %v2846_v37 = vld [vmem:[%s4005_s17] ss:$0 sm:$0xff] }
0x1368   : > { %v2281_v39 = vld [vmem:[#allocation4] sm:$0xf] }
0x1369   : > { %3093 = vmatmul.mubr.msk.bf16.vlgmr.msra.gmra.mrb[40].mxu0 %vm846_vm1, %v2281_v39 }
0x136a   : > { %3112 = vmatprep.mubr.msk.bf16.mxu0 %vm3341_vm2, %v3340_v38  ;;  %3105 = vmatpush3.bf16.msra.mxu0 %v3220_v63 }
0x136b   : > { %3106 = vmatprep.subr.bf16.mxu0 %v3340_v38 }
0x136e   : > { %3107 = vmatpush3.bf16.msra.mxu0 %v3221_v0 }
0x136f   : > { %3108 = vmatprep.subr.bf16.mxu0 %v3340_v38 }
0x1372   : > { %3109 = vmatpush3.bf16.msra.mxu0 %v3222_v1 }
0x1373   : > { %3110 = vmatprep.subr.bf16.mxu0 %v3340_v38 }
0x1376   : > { %3111 = vmatpush3.bf16.msra.mxu0 %v3223_v2 }
0x143c   : > { %v2336_v40 = vpop.f32.mrb[40].mxu0 }
0x143d   : > { %v2342_v42 = vadd.f32 %v2336_v40, %v3753_v26  ;;  %v3094_v43 = vpop.f32.mrb[41].mxu0  ;;  %v3219_v26 = vld [vmem:[%s4001_s13 + $0x18] sm:$0xff]   ;;  %v2847_v40 = vld [vmem:[%s4006_s18] ss:$0 sm:$0xff] }
0x143e   : > { %v2339_v44 = vpop.f32.mrb[42].mxu0  ;;  %3099 = vmatpush3.bf16.msra.mxu1 %v3219_v26 }
0x143f   : > { %v2351_v45 = vadd.f32 %v2816_v41, %v2342_v42  ;;  %v3095_v46 = vpop.f32.mrb[43].mxu0  ;;  %3116 = vmatprep.subr.bf16.mxu1 %v3340_v38 }
0x1441   : > { %v2356_v47 = vsel %vm846_vm1, %v2351_v45, 0.0 }
0x1442   : > { %2357 = vadd.xlane.f32.xlu0 %v2356_v47 }
0x14cf   : > { %v2358_v48 = vpop.xlane.xlu0 %2357 }
0x14d0   : > { %v2359_v49 = vmul.f32 0.03125, %v2358_v48 }
0x14d2   : > { %v2360_v50 = vsub.f32 %v2351_v45, %v2359_v49 }
0x14d4   : > { %v2361_v51 = vmul.f32 %v2360_v50, %v2360_v50 }
0x14d6   : > { %v2362_v52 = vsel %vm846_vm1, %v2361_v51, 0.0 }
0x14d7   : > { %2363 = vadd.xlane.f32.xlu1 %v2362_v52 }
0x1564   : > { %v2364_v55 = vpop.xlane.xlu1 %2363 }
0x1565   : > { %v2365_v56 = vmul.f32 0.03125, %v2364_v55 }
0x1567   : > { %v2366_v54 = vadd.f32 1e-05, %v2365_v56 }
0x1569   : > { %3268 = vrsqrt.f32 %v2366_v54 }
0x1573   : > { %v3269_v58 = vpop.eup %3268 }
0x1574   : > { %v2368_v30 = vmul.f32 %v3269_v58, %v2360_v50 }
0x1576   : > { %v2375_v60 = vmul.f32 %v2819_v59, %v2368_v30 }
0x1578   : > { %v2382_v61 = vadd.f32 %v2820_v57, %v2375_v60 }
0x157a   : > { %v2383_v62 = vpack.c.bf16 %v2382_v61, %v2382_v61 }
0x157c   : > { %3101 = vmatmul.mubr.msk.bf16.vlgmr.msra.gmra.mrb[48].mxu1 %vm846_vm1, %v2383_v62 }
0x157d   : > { %3120 = vmatprep.mubr.msk.bf16.mxu1 %vm3341_vm2, %v3340_v38  ;;  %3117 = vmatpush3.bf16.msra.mxu1 %v3224_v31 }
0x157e   : > { %3118 = vmatprep.subr.bf16.mxu1 %v3340_v38  ;;  %v2848_v38 = vld [vmem:[%s4060_s29] ss:$0 sm:$0xff]  ;;  %s3282_s29 = scalar_lea.vmem %s3281_s22, 128 }
0x157f   : > { %p3284_p1 = scmp.lt.s32.totalorder %s3282_s29, %s3276_s3 }
0x1581   : > { %3119 = vmatpush3.bf16.msra.mxu1 %v3225_v32  ;;  %p3285_p2 = por %p3284_p1, %p3283_p0 }
0x1583   : > { %p3286_p3 = pnand %p3285_p2, %p3279_p13 }
0x164f   : > { %v2446_v4 = vpop.f32.mrb[48].mxu1 }
0x1650   : > { %v2447_v5 = vadd.f32 %v2826_v3, %v2446_v4  ;;  %v3102_v6 = vpop.f32.mrb[49].mxu1 }
0x1651   : > { %v2449_v7 = vpop.f32.mrb[50].mxu1 }
0x1652   : > { %v2830_v8 = vmul.f32 -1.442695, %v2447_v5  ;;  %v3103_v9 = vpop.f32.mrb[51].mxu1 }
0x1654   : > { %3270 = vpow2.f32 %v2830_v8 }
0x165e   : > { %v3271_v10 = vpop.eup %3270 }
0x165f   : > { %v2455_v11 = vadd.f32 1.0, %v3271_v10 }
0x1661   : > { %3272 = vrcp.f32 %v2455_v11 }
0x166b   : > { %v3273_v12 = vpop.eup %3272 }
0x166c   : > { %v2458_v13 = vmul.f32 %v3273_v12, %v2447_v5 }
0x166e   : > { %v2459_v14 = vpack.c.bf16 %v2458_v13, %v2458_v13 }
0x1670   : > { %3113 = vmatmul.mubr.msk.bf16.vlgmr.msra.gmra.mrb[44].mxu0 %vm1640_vm10, %v2459_v14 }
0x1743   : > { %v2530_v15 = vpop.f32.mrb[44].mxu0 }
0x1744   : > { %v2536_v17 = vadd.f32 %v2530_v15, %v2351_v45  ;;  %v3114_v18 = vpop.f32.mrb[45].mxu0 }
0x1745   : > { %v2533_v19 = vpop.f32.mrb[46].mxu0 }
0x1746   : > { %v2545_v20 = vadd.f32 %v2845_v16, %v2536_v17  ;;  %v3115_v21 = vpop.f32.mrb[47].mxu0 }
0x1748   : > { %2546 = vst.msk [vmem:[#allocation2] sm:$0xff] %vm846_vm1, %v2545_v20 }
0x174f   : > { %v2547_v22 = vld [vmem:[#allocation2] sm:$0xf] }
0x1750   : > { %v2550_v23 = vsel %vm840_vm0, %v2547_v22, 0.0 }
0x1751   : > { %2551 = vadd.xlane.f32.xlu0 %v2550_v23 }
0x17de   : > { %v2552_v24 = vpop.xlane.xlu0 %2551 }
0x17df   : > { %v2553_v25 = vmul.f32 0.03125, %v2552_v24 }
0x17e1   : > { %v2554_v27 = vsub.f32 %v2547_v22, %v2553_v25 }
0x17e3   : > { %v2555_v28 = vmul.f32 %v2554_v27, %v2554_v27 }
0x17e5   : > { %v2556_v29 = vsel %vm840_vm0, %v2555_v28, 0.0 }
0x17e6   : > { %2557 = vadd.xlane.f32.xlu0 %v2556_v29 }
0x1873   : > { %v2558_v33 = vpop.xlane.xlu0 %2557 }
0x1874   : > { %v2559_v34 = vmul.f32 0.03125, %v2558_v33 }
0x1876   : > { %v2560_v35 = vadd.f32 1e-05, %v2559_v34 }
0x1878   : > { %3274 = vrsqrt.f32 %v2560_v35 }
0x1882   : > { %v3275_v36 = vpop.eup %3274 }
0x1883   : > { %v2562_v39 = vmul.f32 %v3275_v36, %v2554_v27 }
0x1885   : > { %v2569_v41 = vmul.f32 %v2846_v37, %v2562_v39 }
0x1887   : > { %v2576_v42 = vadd.f32 %v2847_v40, %v2569_v41 }
0x1889   : > { %v2577_v43 = vpack.c.bf16 %v2576_v42, %v2576_v42 }
0x188b   : > { %3121 = vmatmul.mubr.msk.bf16.vlgmr.msra.gmra.mrb[52].mxu1 %vm846_vm1, %v2577_v43 }
0x195e   : > { %v2638_v44 = vpop.f32.mrb[52].mxu1 }
0x195f   : > { %v2639_v45 = vadd.f32 %v2848_v38, %v2638_v44  ;;  %v3122_v46 = vpop.f32.mrb[53].mxu1 }
0x1960   : > { %v2641_v47 = vpop.f32.mrb[54].mxu1 }
0x1961   : > { %2644 = vst [vmem:[%s649_s30] sm:$0xf] %v2639_v45  ;;  %v3123_v48 = vpop.f32.mrb[55].mxu1 }
0x1962   : > { %3289 = shalt.err (!%p3286_p3)
}
0x1963   : > { %s3290_s2 = scalar_lea.hbm %s3946_s20, 64  ;;  %s3294_s28 = scalar_lea.hbm %s4062_s23, 128 }
0x1964   : > { %p3291_p4 = scmp.ne.s32.totalorder %s3946_s20, %s3290_s2  ;;  %p3295_p9 = scmp.lt.u32.totalorder %s3946_s20, %s4062_s23 }
0x1965   : > { %p3296_p10 = scmp.lt.u32.totalorder %s3294_s28, %s3290_s2  ;;  %p3298_p12 = scmp.lt.u32.totalorder %s3290_s2, %s3946_s20 }
0x1966   : > { %p3292_p7 = pnand %p3291_p4, %p3505_p5 }
0x1967   : > { %p3297_p11 = por %p3296_p10, %p3295_p9 }
0x1968   : > { %p3293_p8 = pneg %p3292_p7 }
0x1969   : > { %p3299_p13 = por %p3298_p12, %p3297_p11 }
0x196b   : > { %p3300_p0 = pnand %p3299_p13, %p3293_p8 }
0x196d   : > { %3303 = shalt.err (!%p3300_p0)
}
0x196e   : > { %3124 = dma.vmem_to_hbm [thread:$0]  (%p3505_p5), %s3948_s26, 64, %s3946_s20, %s2646_s1  }
0x196f PF: > { %s4063_s3 = sld [smem:[#allocation10_spill]]  ;;  %s4064_s22 = sld [smem:[#allocation8_spill]] }
0x1975   : > { %p3130_p1 = scmp.ge.s32.totalorder %s4063_s3, 2  ;;  %s2671_s4 = sand.u32 1, %s4064_s22  }
0x1976   : > { %s2672_s30 = scalar_lea.sflag [#allocation6], %s2671_s4 }
0x1977   : > { %p3127_p2 = pnand %p3130_p1, %p3509_p6 }
0x1979   : > { %3321 = dma.done.wait (!%p3127_p2), %s2672_s30, 64  }
0x197a   : > { %3323 = vsyncadd (!%p3127_p2), %s2672_s30, 4294967232  ;;  %s4066_s27 = sld [smem:[#allocation11_spill]]  ;;  %s4067_s28 = sld [smem:[#allocation9_spill]] }
0x197b   : > { %s4068_s26 = sld [smem:[#allocation12_spill]]  ;;  %s4069_s2 = smov %s3330_s25 }
0x1980   : > { %p31_p3 = scmp.ge.s32.totalorder %s4066_s27, 4   ;;  %s4070_s25 = smov %s4067_s28 }
0x1982   :  { %33 = sbr.rel (!%p31_p3) target bundleno = 12 (0xc), region = 151 }
0x1989   :  { %2677 = vsyncpa [#allocation6], 1 }
0x198a   :  { %2679 = vsyncpa [#allocation6 + $0x1], 1 }

</bundles_post_ra>
